<compile_context>
chip_gen: v7x
topology: tpu7x:2x2x1
jax: 0.10.0
libtpu: 0.0.40
codegen_flags: <defaults>
</compile_context>

<pallas_src>
import functools
import math

import jax
import jax.numpy as jnp
import numpy as np
from jax.experimental import pallas as pl
from jax.experimental.pallas import tpu as pltpu


def _resnet_block_kernel(x_ref, w1c_ref, w2_ref, w3_ref, pcs_ref, wfc_ref,
                         bfc_ref, pool_ref, o_ref):
    """One grid step == G lane-stacked batches.

    x_ref   : (C_pad, G*L)          f32  channels on sublanes, batch-major lanes
    w1c_ref : (2*planes, K1*C_pad)  mm   conv1 im2col weights + 1x1 shortcut
    w2_ref  : (planes, K2*planes)   mm
    w3_ref  : (planes, K3*planes)   mm
    pcs_ref : (planes, 8)           f32  [s1 c1 s2 c2 s3 c3 s_sc c_sc]
    wfc_ref : (planes, 1)           f32  fc weight column
    bfc_ref : (1, 1)                f32  fc bias
    pool_ref: (G*L, G)              f32  per-batch mean-pooling matrix (1/L)
    o_ref   : (1, 8, G)             f32  sigmoid(fc(pool(resblock(x)))), row-bcast
    """
    C_pad, GL = x_ref.shape
    planes = pcs_ref.shape[0]
    G = o_ref.shape[2]
    L = GL // G
    mm_dtype = w2_ref.dtype
    K1 = w1c_ref.shape[1] // C_pad
    K2 = w2_ref.shape[1] // planes
    K3 = w3_ref.shape[1] // planes

    # ---- hoisted once per tile, shared by every conv -----------------------
    pcs = pcs_ref[...]
    s1, c1 = pcs[:, 0:1], pcs[:, 1:2]
    s2, c2 = pcs[:, 2:3], pcs[:, 3:4]
    s3, c3 = pcs[:, 4:5], pcs[:, 5:6]
    ssc, csc = pcs[:, 6:7], pcs[:, 7:8]
    s_comb = jnp.concatenate([s1, ssc], axis=0)            # (2*planes, 1)
    c_comb = jnp.concatenate([c1, csc], axis=0)

    # 'same'-padding validity masks per tap shift d, built from the WITHIN-BATCH
    # position so pltpu.roll wrap-around across batch boundaries (and across the
    # slab ends) is zeroed.
    pos = jax.lax.broadcasted_iota(jnp.int32, (1, GL), 1) % L
    shifts = set()
    for k in (K1, K2, K3):
        left = (k - 1) // 2
        shifts.update(j - left for j in range(k))
    masks = {d: ((pos + d >= 0) & (pos + d < L)).astype(jnp.float32)
             for d in sorted(shifts) if d != 0}

    def im2col(inp, k):
        """(C, G*L) -> (k*C, G*L): k shifted+masked taps stacked on sublanes."""
        left = (k - 1) // 2
        taps = []
        for j in range(k):
            d = j - left
            if d == 0:
                taps.append(inp)
            else:
                taps.append(pltpu.roll(inp, shift=(-d) % GL, axis=1) * masks[d])
        return jnp.concatenate(taps, axis=0).astype(mm_dtype)

    x = x_ref[...]                                               # (C_pad, G*L)
    # conv1 (k=K1) and the 1x1/identity shortcut: ONE fused MXU matmul.
    y = jnp.dot(w1c_ref[...], im2col(x, K1), preferred_element_type=jnp.float32)
    y = y * s_comb + c_comb                      # folded BN (+ conv bias)
    h = jnp.maximum(y[:planes], 0.0)             # relu(bn1(conv1(x)))
    sc = y[planes:]                              # bn_sc(shortcut(x))
    # conv2 -> bn2 -> relu
    h = jnp.dot(w2_ref[...], im2col(h, K2), preferred_element_type=jnp.float32)
    h = jnp.maximum(h * s2 + c2, 0.0)
    # conv3 -> bn3, residual add, relu
    h = jnp.dot(w3_ref[...], im2col(h, K3), preferred_element_type=jnp.float32)
    h = jnp.maximum(h * s3 + c3 + sc, 0.0)                       # (planes, G*L)
    # Dropout(0.4): eval-mode identity.
    # TODO(synk): training-mode dropout RNG mask not reproduced.
    # adaptive_avg_pool1d(1): one (planes, G*L) @ (G*L, G) f32 pooling matmul.
    pooled = jnp.dot(h, pool_ref[...], preferred_element_type=jnp.float32)   # (planes, G)
    # Linear(planes, 1): weighted sublane reduce (no degenerate M=1 MXU push).
    logit = jnp.sum(pooled * wfc_ref[...], axis=0, keepdims=True) + bfc_ref[...]  # (1, G)
    prob = jax.nn.sigmoid(logit)
    o_ref[0] = jnp.broadcast_to(prob, (8, G))    # lane-dense output block


def _pick_group(B, L, C_pad, planes, kmax, mm_itemsize, vmem_cap_bytes):
    """Batches per grid step: lane width G*L a multiple of 256, tile grown to the
    per-generation VMEM cap, grid kept >= 2 when B allows (v7x's 2 TCs)."""
    g = 256 // math.gcd(L, 256)              # smallest G with (G*L) % 256 == 0

    def tile_bytes(gg):
        lanes = gg * L
        return (2 * C_pad * lanes * 4                  # double-buffered x tile
                + kmax * lanes * (4 + mm_itemsize)     # largest im2col tap stack
                + 10 * planes * lanes * 4              # live f32 activations
                + lanes * gg * 4)                      # pooling matrix

    while (B > 2 * g                         # keep >= 2 grid steps after doubling
           and 2 * g * L <= 8192             # don't over-grow the lane dim
           and 2 * tile_bytes(2 * g) <= vmem_cap_bytes):
        g *= 2
    return g


def resnet_test_forward(x, params, *, matmul_dtype=jnp.bfloat16, group=None):
    """x: (B, C_in, L) float32 (PyTorch NCL). Returns (B, 1) like ResNetTest."""
    B, C_in, L = x.shape
    planes = params["w1"].shape[0]
    eps = 1e-5
    mm_itemsize = jnp.dtype(matmul_dtype).itemsize
    mm = lambda a: a.astype(matmul_dtype)

    # ---- fold BN (+ conv bias) into per-channel scale/offset ----------------
    def bn_fold(g, b, m, v):
        s = g / jnp.sqrt(v + eps)
        return s, b - m * s

    s1, o1 = bn_fold(*params["bn1"])
    s2, o2 = bn_fold(*params["bn2"])
    s3, o3 = bn_fold(*params["bn3"])
    ssc, osc = bn_fold(*params["bnsc"])
    c1 = s1 * params["b1"] + o1
    c2 = s2 * params["b2"] + o2
    c3 = s3 * params["b3"] + o3

    # ---- conv weights (O, C, K) -> im2col layout (O, K*C_pad), 8-aligned C ---
    C_pad = max(8, -(-C_in // 8) * 8)
    K1 = params["w1"].shape[2]
    K2 = params["w2"].shape[2]
    K3 = params["w3"].shape[2]

    def im2col_w(w, cpad):
        O, C, K = w.shape
        if cpad != C:
            w = jnp.pad(w, ((0, 0), (0, cpad - C), (0, 0)))
        return jnp.transpose(w, (0, 2, 1)).reshape(O, K * cpad).astype(jnp.float32)

    w1 = im2col_w(params["w1"], C_pad)
    w2 = im2col_w(params["w2"], planes)
    w3 = im2col_w(params["w3"], planes)

    # 1x1 shortcut conv (identity when in_planes == planes) placed at conv1's
    # d == 0 tap so conv1 + shortcut become one matmul.
    if params["wsc"] is not None:
        wsc = params["wsc"][:, :, 0].astype(jnp.float32)
    else:
        wsc = jnp.eye(planes, dtype=jnp.float32)
    wsc = jnp.pad(wsc, ((0, 0), (0, C_pad - wsc.shape[1])))
    left1 = (K1 - 1) // 2
    wsc_row = jnp.zeros((planes, K1 * C_pad), jnp.float32)
    wsc_row = wsc_row.at[:, left1 * C_pad:(left1 + 1) * C_pad].set(wsc)
    w1c = jnp.concatenate([w1, wsc_row], axis=0)          # (2*planes, K1*C_pad)

    col = lambda v: v.reshape(-1, 1).astype(jnp.float32)
    pcs = jnp.concatenate([col(s1), col(c1), col(s2), col(c2),
                           col(s3), col(c3), col(ssc), col(osc)], axis=1)
    wfc_col = params["wfc"].reshape(planes, 1).astype(jnp.float32)
    bfc = params["bfc"].reshape(1, 1).astype(jnp.float32)

    # ---- generation-aware VMEM cap & batch-group sizing ----------------------
    try:
        phys_vmem = int(pltpu.get_tpu_info().vmem_capacity_bytes)
    except Exception:
        phys_vmem = 64 * 1024 * 1024          # conservative default (v7x per-TC)
    vmem_cap = int(max(32 << 20, min(phys_vmem - (16 << 20), 100 << 20)))

    kmax = max(K1 * C_pad, K2 * planes, K3 * planes)
    G = group if group is not None else _pick_group(
        B, L, C_pad, planes, kmax, mm_itemsize, vmem_cap)
    B_pad = -(-B // G) * G
    if (B_pad // G) > 1 and (G * L) % 128 != 0:
        G = B_pad                              # single full tile keeps BlockSpec legal
    grid = B_pad // G

    # ---- lane-stacked x slab: (B, C, L) -> (C_pad, B_pad*L) ------------------
    x_p = x.astype(jnp.float32)
    if B_pad != B or C_pad != C_in:
        x_p = jnp.pad(x_p, ((0, B_pad - B), (0, C_pad - C_in), (0, 0)))
    x_slab = jnp.transpose(x_p, (1, 0, 2)).reshape(C_pad, B_pad * L)

    # per-batch mean-pooling matrix (kept f32 so pooling stays exact on both paths)
    pool = ((jnp.arange(G * L)[:, None] // L) ==
            jnp.arange(G)[None, :]).astype(jnp.float32) / L        # (G*L, G)

    args = (x_slab, mm(w1c), mm(w2), mm(w3), pcs, wfc_col, bfc, pool)

    # per-step VMEM estimate -> limit, clamped per generation
    lanes = G * L
    tile_est = (2 * C_pad * lanes * 4 + kmax * lanes * (4 + mm_itemsize)
                + 10 * planes * lanes * 4 + pool.size * 4)
    vmem_limit = int(min(vmem_cap, max(32 << 20, 4 * tile_est)))

    resident = lambda a: pl.BlockSpec(a.shape, lambda i: (0, 0))
    grid_spec = pltpu.PrefetchScalarGridSpec(
        num_scalar_prefetch=0,
        grid=(grid,),
        in_specs=[pl.BlockSpec((C_pad, G * L), lambda i: (0, i))]
                 + [resident(a) for a in args[1:]],
        out_specs=pl.BlockSpec((1, 8, G), lambda i: (i, 0, 0)),
    )
    out = pl.pallas_call(
        _resnet_block_kernel,
        out_shape=jax.ShapeDtypeStruct((grid, 8, G), jnp.float32),
        grid_spec=grid_spec,
        compiler_params=pltpu.CompilerParams(
            dimension_semantics=("parallel",),   # shard batch tiles over v7x's 2 TCs
            vmem_limit_bytes=vmem_limit),
    )(*args)
    return out[:, 0, :].reshape(B_pad, 1)[:B]


def init_params(key, n_features, planes=32):
    ks = jax.random.split(key, 13)

    def conv_w(k, o, c, ksz):
        return jax.random.normal(k, (o, c, ksz), jnp.float32) * 0.1

    def bn(k):
        k1, k2, k3, k4 = jax.random.split(k, 4)
        g = jax.random.uniform(k1, (planes,), jnp.float32, 0.5, 1.5)
        b = jax.random.normal(k2, (planes,), jnp.float32) * 0.1
        m = jax.random.normal(k3, (planes,), jnp.float32) * 0.1
        v = jax.random.uniform(k4, (planes,), jnp.float32, 0.5, 1.5)
        return (g, b, m, v)

    params = {
        "w1": conv_w(ks[0], planes, n_features, 8),
        "b1": jax.random.normal(ks[1], (planes,), jnp.float32) * 0.1,
        "bn1": bn(ks[2]),
        "w2": conv_w(ks[3], planes, planes, 5),
        "b2": jax.random.normal(ks[4], (planes,), jnp.float32) * 0.1,
        "bn2": bn(ks[5]),
        "w3": conv_w(ks[6], planes, planes, 3),
        "b3": jax.random.normal(ks[7], (planes,), jnp.float32) * 0.1,
        "bn3": bn(ks[8]),
        "bnsc": bn(ks[9]),
        "wfc": jax.random.normal(ks[10], (1, planes), jnp.float32) * 0.1,
        "bfc": jax.random.normal(ks[11], (1,), jnp.float32) * 0.1,
        "wsc": conv_w(ks[12], planes, n_features, 1) if n_features != planes else None,
    }
    return params


def reference_forward(x, params):
    """Pure-JAX replica of ResNetTest.forward (eval mode) for verification."""
    eps = 1e-5

    def conv1d_same(x, w, b, k):
        left = (k - 1) // 2
        right = k - 1 - left
        out = jax.lax.conv_general_dilated(
            x, w, window_strides=(1,), padding=[(left, right)],
            dimension_numbers=("NCH", "OIH", "NCH"))
        if b is not None:
            out = out + b[None, :, None]
        return out

    def bn(x, p):
        g, b, m, v = p
        return (g[None, :, None] * (x - m[None, :, None])
                / jnp.sqrt(v[None, :, None] + eps) + b[None, :, None])

    h = jax.nn.relu(bn(conv1d_same(x, params["w1"], params["b1"], 8), params["bn1"]))
    h = jax.nn.relu(bn(conv1d_same(h, params["w2"], params["b2"], 5), params["bn2"]))
    h = bn(conv1d_same(h, params["w3"], params["b3"], 3), params["bn3"])
    if params["wsc"] is not None:
        sc = bn(conv1d_same(x, params["wsc"], None, 1), params["bnsc"])
    else:
        sc = bn(x, params["bnsc"])
    h = jax.nn.relu(h + sc)
    pooled = jnp.mean(h, axis=-1)                  # adaptive_avg_pool1d(., 1) + flatten
    y = pooled @ params["wfc"].T + params["bfc"]
    return jax.nn.sigmoid(y)


if __name__ == "__main__":
    B, n_features, L = 2, 4, 16
    key = jax.random.PRNGKey(0)
    kx, kp = jax.random.split(key)
    x = jax.random.normal(kx, (B, n_features, L), jnp.float32)
    params = init_params(kp, n_features)

    ref = reference_forward(x, params)

    # exact path: f32 MXU operands
    fwd_exact = jax.jit(functools.partial(resnet_test_forward,
                                          matmul_dtype=jnp.float32))
    out_f32 = jax.block_until_ready(fwd_exact(x, params))
    assert out_f32.shape == (B, 1)
    np.testing.assert_allclose(np.asarray(out_f32), np.asarray(ref),
                               rtol=1e-3, atol=1e-5)

    # fast default path: bf16 MXU operands, f32 accumulation / elementwise
    fwd_fast = jax.jit(resnet_test_forward)
    out_bf16 = jax.block_until_ready(fwd_fast(x, params))
    assert out_bf16.shape == (B, 1)
    np.testing.assert_allclose(np.asarray(out_bf16), np.asarray(ref),
                               rtol=2e-2, atol=2e-2)

    print("KERNEL_OK")
</pallas_src>

<mosaic_0001>
module attributes {stable_mosaic.version = 11 : i64} {
  func.func @_resnet_block_kernel(%arg0: i32, %arg1: memref<8x256xf32, #tpu.memory_space<vmem>>, %arg2: memref<64x64xf32, #tpu.memory_space<vmem>>, %arg3: memref<32x160xf32, #tpu.memory_space<vmem>>, %arg4: memref<32x96xf32, #tpu.memory_space<vmem>>, %arg5: memref<32x8xf32, #tpu.memory_space<vmem>>, %arg6: memref<32x1xf32, #tpu.memory_space<vmem>>, %arg7: memref<1x1xf32, #tpu.memory_space<vmem>>, %arg8: memref<256x16xf32, #tpu.memory_space<vmem>>, %arg9: memref<1x8x16xf32, #tpu.memory_space<vmem>>) attributes {dimension_semantics = [#tpu.dimension_semantics<parallel>], iteration_bounds = array<i64: 1>, scalar_prefetch = 0 : i64, scratch_operands = 0 : i64, tpu.core_type = #tpu.core_type<tc>, window_params = [{transform_indices = @transform_0, window_bounds = array<i64: 8, 256>}, {pipeline_mode = #tpu.pipeline_mode<synchronous>, transform_indices = @transform_1, window_bounds = array<i64: 64, 64>}, {pipeline_mode = #tpu.pipeline_mode<synchronous>, transform_indices = @transform_2, window_bounds = array<i64: 32, 160>}, {pipeline_mode = #tpu.pipeline_mode<synchronous>, transform_indices = @transform_3, window_bounds = array<i64: 32, 96>}, {pipeline_mode = #tpu.pipeline_mode<synchronous>, transform_indices = @transform_4, window_bounds = array<i64: 32, 8>}, {pipeline_mode = #tpu.pipeline_mode<synchronous>, transform_indices = @transform_5, window_bounds = array<i64: 32, 1>}, {pipeline_mode = #tpu.pipeline_mode<synchronous>, transform_indices = @transform_6, window_bounds = array<i64: 1, 1>}, {pipeline_mode = #tpu.pipeline_mode<synchronous>, transform_indices = @transform_7, window_bounds = array<i64: 256, 16>}, {transform_indices = @transform_8, window_bounds = array<i64: 1, 8, 16>}]} {
    %c0 = arith.constant 0 : index
    %c0_0 = arith.constant 0 : index
    %0 = vector.load %arg5[%c0, %c0_0] : memref<32x8xf32, #tpu.memory_space<vmem>>, vector<32x8xf32>
    %1 = vector.extract_strided_slice %0 {offsets = [0, 0], sizes = [32, 1], strides = [1, 1]} : vector<32x8xf32> to vector<32x1xf32>
    %2 = vector.extract_strided_slice %0 {offsets = [0, 1], sizes = [32, 1], strides = [1, 1]} : vector<32x8xf32> to vector<32x1xf32>
    %3 = vector.extract_strided_slice %0 {offsets = [0, 2], sizes = [32, 1], strides = [1, 1]} : vector<32x8xf32> to vector<32x1xf32>
    %4 = vector.extract_strided_slice %0 {offsets = [0, 3], sizes = [32, 1], strides = [1, 1]} : vector<32x8xf32> to vector<32x1xf32>
    %5 = vector.extract_strided_slice %0 {offsets = [0, 4], sizes = [32, 1], strides = [1, 1]} : vector<32x8xf32> to vector<32x1xf32>
    %6 = vector.extract_strided_slice %0 {offsets = [0, 5], sizes = [32, 1], strides = [1, 1]} : vector<32x8xf32> to vector<32x1xf32>
    %7 = vector.extract_strided_slice %0 {offsets = [0, 6], sizes = [32, 1], strides = [1, 1]} : vector<32x8xf32> to vector<32x1xf32>
    %8 = vector.extract_strided_slice %0 {offsets = [0, 7], sizes = [32, 1], strides = [1, 1]} : vector<32x8xf32> to vector<32x1xf32>
    %9 = tpu.concatenate %1, %7 in 0 : vector<32x1xf32>, vector<32x1xf32> -> vector<64x1xf32>
    %10 = tpu.concatenate %2, %8 in 0 : vector<32x1xf32>, vector<32x1xf32> -> vector<64x1xf32>
    %11 = tpu.iota {dimensions = array<i32: 1>} : vector<1x256xi32>
    %c16_i32 = arith.constant 16 : i32
    %c0_i32 = arith.constant 0 : i32
    %12 = arith.cmpi eq, %c16_i32, %c0_i32 : i32
    %c1_i32 = arith.constant 1 : i32
    %13 = arith.select %12, %c1_i32, %c16_i32 : i32
    %14 = vector.broadcast %13 : i32 to vector<1x256xi32>
    %15 = arith.remsi %11, %14 : vector<1x256xi32>
    %c0_i32_1 = arith.constant 0 : i32
    %16 = vector.broadcast %c0_i32_1 : i32 to vector<1x256xi32>
    %17 = arith.cmpi ne, %15, %16 : vector<1x256xi32>
    %c0_i32_2 = arith.constant 0 : i32
    %18 = vector.broadcast %c0_i32_2 : i32 to vector<1x256xi32>
    %19 = arith.cmpi slt, %15, %18 : vector<1x256xi32>
    %c0_i32_3 = arith.constant 0 : i32
    %20 = arith.cmpi slt, %13, %c0_i32_3 : i32
    %21 = vector.broadcast %20 : i1 to vector<1x256xi1>
    %22 = vector.broadcast %21 : vector<1x256xi1> to vector<1x256xi1>
    %23 = arith.xori %19, %22 : vector<1x256xi1>
    %24 = arith.andi %23, %17 : vector<1x256xi1>
    %25 = vector.broadcast %13 : i32 to vector<1x256xi32>
    %26 = arith.addi %15, %25 : vector<1x256xi32>
    %27 = arith.select %24, %26, %15 : vector<1x256xi1>, vector<1x256xi32>
    %c-3_i32 = arith.constant -3 : i32
    %28 = vector.broadcast %c-3_i32 : i32 to vector<1x256xi32>
    %29 = arith.addi %27, %28 : vector<1x256xi32>
    %c0_i32_4 = arith.constant 0 : i32
    %30 = vector.broadcast %c0_i32_4 : i32 to vector<1x256xi32>
    %31 = arith.cmpi sge, %29, %30 : vector<1x256xi32>
    %c-3_i32_5 = arith.constant -3 : i32
    %32 = vector.broadcast %c-3_i32_5 : i32 to vector<1x256xi32>
    %33 = arith.addi %27, %32 : vector<1x256xi32>
    %c16_i32_6 = arith.constant 16 : i32
    %34 = vector.broadcast %c16_i32_6 : i32 to vector<1x256xi32>
    %35 = arith.cmpi slt, %33, %34 : vector<1x256xi32>
    %36 = arith.andi %31, %35 : vector<1x256xi1>
    %37 = arith.extui %36 : vector<1x256xi1> to vector<1x256xi32>
    %38 = arith.sitofp %37 : vector<1x256xi32> to vector<1x256xf32>
    %c-2_i32 = arith.constant -2 : i32
    %39 = vector.broadcast %c-2_i32 : i32 to vector<1x256xi32>
    %40 = arith.addi %27, %39 : vector<1x256xi32>
    %c0_i32_7 = arith.constant 0 : i32
    %41 = vector.broadcast %c0_i32_7 : i32 to vector<1x256xi32>
    %42 = arith.cmpi sge, %40, %41 : vector<1x256xi32>
    %c-2_i32_8 = arith.constant -2 : i32
    %43 = vector.broadcast %c-2_i32_8 : i32 to vector<1x256xi32>
    %44 = arith.addi %27, %43 : vector<1x256xi32>
    %c16_i32_9 = arith.constant 16 : i32
    %45 = vector.broadcast %c16_i32_9 : i32 to vector<1x256xi32>
    %46 = arith.cmpi slt, %44, %45 : vector<1x256xi32>
    %47 = arith.andi %42, %46 : vector<1x256xi1>
    %48 = arith.extui %47 : vector<1x256xi1> to vector<1x256xi32>
    %49 = arith.sitofp %48 : vector<1x256xi32> to vector<1x256xf32>
    %c-1_i32 = arith.constant -1 : i32
    %50 = vector.broadcast %c-1_i32 : i32 to vector<1x256xi32>
    %51 = arith.addi %27, %50 : vector<1x256xi32>
    %c0_i32_10 = arith.constant 0 : i32
    %52 = vector.broadcast %c0_i32_10 : i32 to vector<1x256xi32>
    %53 = arith.cmpi sge, %51, %52 : vector<1x256xi32>
    %c-1_i32_11 = arith.constant -1 : i32
    %54 = vector.broadcast %c-1_i32_11 : i32 to vector<1x256xi32>
    %55 = arith.addi %27, %54 : vector<1x256xi32>
    %c16_i32_12 = arith.constant 16 : i32
    %56 = vector.broadcast %c16_i32_12 : i32 to vector<1x256xi32>
    %57 = arith.cmpi slt, %55, %56 : vector<1x256xi32>
    %58 = arith.andi %53, %57 : vector<1x256xi1>
    %59 = arith.extui %58 : vector<1x256xi1> to vector<1x256xi32>
    %60 = arith.sitofp %59 : vector<1x256xi32> to vector<1x256xf32>
    %c1_i32_13 = arith.constant 1 : i32
    %61 = vector.broadcast %c1_i32_13 : i32 to vector<1x256xi32>
    %62 = arith.addi %27, %61 : vector<1x256xi32>
    %c0_i32_14 = arith.constant 0 : i32
    %63 = vector.broadcast %c0_i32_14 : i32 to vector<1x256xi32>
    %64 = arith.cmpi sge, %62, %63 : vector<1x256xi32>
    %c1_i32_15 = arith.constant 1 : i32
    %65 = vector.broadcast %c1_i32_15 : i32 to vector<1x256xi32>
    %66 = arith.addi %27, %65 : vector<1x256xi32>
    %c16_i32_16 = arith.constant 16 : i32
    %67 = vector.broadcast %c16_i32_16 : i32 to vector<1x256xi32>
    %68 = arith.cmpi slt, %66, %67 : vector<1x256xi32>
    %69 = arith.andi %64, %68 : vector<1x256xi1>
    %70 = arith.extui %69 : vector<1x256xi1> to vector<1x256xi32>
    %71 = arith.sitofp %70 : vector<1x256xi32> to vector<1x256xf32>
    %c2_i32 = arith.constant 2 : i32
    %72 = vector.broadcast %c2_i32 : i32 to vector<1x256xi32>
    %73 = arith.addi %27, %72 : vector<1x256xi32>
    %c0_i32_17 = arith.constant 0 : i32
    %74 = vector.broadcast %c0_i32_17 : i32 to vector<1x256xi32>
    %75 = arith.cmpi sge, %73, %74 : vector<1x256xi32>
    %c2_i32_18 = arith.constant 2 : i32
    %76 = vector.broadcast %c2_i32_18 : i32 to vector<1x256xi32>
    %77 = arith.addi %27, %76 : vector<1x256xi32>
    %c16_i32_19 = arith.constant 16 : i32
    %78 = vector.broadcast %c16_i32_19 : i32 to vector<1x256xi32>
    %79 = arith.cmpi slt, %77, %78 : vector<1x256xi32>
    %80 = arith.andi %75, %79 : vector<1x256xi1>
    %81 = arith.extui %80 : vector<1x256xi1> to vector<1x256xi32>
    %82 = arith.sitofp %81 : vector<1x256xi32> to vector<1x256xf32>
    %c3_i32 = arith.constant 3 : i32
    %83 = vector.broadcast %c3_i32 : i32 to vector<1x256xi32>
    %84 = arith.addi %27, %83 : vector<1x256xi32>
    %c0_i32_20 = arith.constant 0 : i32
    %85 = vector.broadcast %c0_i32_20 : i32 to vector<1x256xi32>
    %86 = arith.cmpi sge, %84, %85 : vector<1x256xi32>
    %c3_i32_21 = arith.constant 3 : i32
    %87 = vector.broadcast %c3_i32_21 : i32 to vector<1x256xi32>
    %88 = arith.addi %27, %87 : vector<1x256xi32>
    %c16_i32_22 = arith.constant 16 : i32
    %89 = vector.broadcast %c16_i32_22 : i32 to vector<1x256xi32>
    %90 = arith.cmpi slt, %88, %89 : vector<1x256xi32>
    %91 = arith.andi %86, %90 : vector<1x256xi1>
    %92 = arith.extui %91 : vector<1x256xi1> to vector<1x256xi32>
    %93 = arith.sitofp %92 : vector<1x256xi32> to vector<1x256xf32>
    %c4_i32 = arith.constant 4 : i32
    %94 = vector.broadcast %c4_i32 : i32 to vector<1x256xi32>
    %95 = arith.addi %27, %94 : vector<1x256xi32>
    %c0_i32_23 = arith.constant 0 : i32
    %96 = vector.broadcast %c0_i32_23 : i32 to vector<1x256xi32>
    %97 = arith.cmpi sge, %95, %96 : vector<1x256xi32>
    %c4_i32_24 = arith.constant 4 : i32
    %98 = vector.broadcast %c4_i32_24 : i32 to vector<1x256xi32>
    %99 = arith.addi %27, %98 : vector<1x256xi32>
    %c16_i32_25 = arith.constant 16 : i32
    %100 = vector.broadcast %c16_i32_25 : i32 to vector<1x256xi32>
    %101 = arith.cmpi slt, %99, %100 : vector<1x256xi32>
    %102 = arith.andi %97, %101 : vector<1x256xi1>
    %103 = arith.extui %102 : vector<1x256xi1> to vector<1x256xi32>
    %104 = arith.sitofp %103 : vector<1x256xi32> to vector<1x256xf32>
    %c0_26 = arith.constant 0 : index
    %c0_27 = arith.constant 0 : index
    %105 = vector.load %arg1[%c0_26, %c0_27] : memref<8x256xf32, #tpu.memory_space<vmem>>, vector<8x256xf32>
    %c0_28 = arith.constant 0 : index
    %c0_29 = arith.constant 0 : index
    %106 = vector.load %arg2[%c0_28, %c0_29] : memref<64x64xf32, #tpu.memory_space<vmem>>, vector<64x64xf32>
    %c3_i32_30 = arith.constant 3 : i32
    %107 = tpu.dynamic_rotate %105 by %c3_i32_30 dim 1 : vector<8x256xf32>, i32 -> vector<8x256xf32>
    %108 = vector.broadcast %38 : vector<1x256xf32> to vector<8x256xf32>
    %109 = arith.mulf %107, %108 : vector<8x256xf32>
    %c2_i32_31 = arith.constant 2 : i32
    %110 = tpu.dynamic_rotate %105 by %c2_i32_31 dim 1 : vector<8x256xf32>, i32 -> vector<8x256xf32>
    %111 = vector.broadcast %49 : vector<1x256xf32> to vector<8x256xf32>
    %112 = arith.mulf %110, %111 : vector<8x256xf32>
    %c1_i32_32 = arith.constant 1 : i32
    %113 = tpu.dynamic_rotate %105 by %c1_i32_32 dim 1 : vector<8x256xf32>, i32 -> vector<8x256xf32>
    %114 = vector.broadcast %60 : vector<1x256xf32> to vector<8x256xf32>
    %115 = arith.mulf %113, %114 : vector<8x256xf32>
    %c255_i32 = arith.constant 255 : i32
    %116 = tpu.dynamic_rotate %105 by %c255_i32 dim 1 : vector<8x256xf32>, i32 -> vector<8x256xf32>
    %117 = vector.broadcast %71 : vector<1x256xf32> to vector<8x256xf32>
    %118 = arith.mulf %116, %117 : vector<8x256xf32>
    %c254_i32 = arith.constant 254 : i32
    %119 = tpu.dynamic_rotate %105 by %c254_i32 dim 1 : vector<8x256xf32>, i32 -> vector<8x256xf32>
    %120 = vector.broadcast %82 : vector<1x256xf32> to vector<8x256xf32>
    %121 = arith.mulf %119, %120 : vector<8x256xf32>
    %c253_i32 = arith.constant 253 : i32
    %122 = tpu.dynamic_rotate %105 by %c253_i32 dim 1 : vector<8x256xf32>, i32 -> vector<8x256xf32>
    %123 = vector.broadcast %93 : vector<1x256xf32> to vector<8x256xf32>
    %124 = arith.mulf %122, %123 : vector<8x256xf32>
    %c252_i32 = arith.constant 252 : i32
    %125 = tpu.dynamic_rotate %105 by %c252_i32 dim 1 : vector<8x256xf32>, i32 -> vector<8x256xf32>
    %126 = vector.broadcast %104 : vector<1x256xf32> to vector<8x256xf32>
    %127 = arith.mulf %125, %126 : vector<8x256xf32>
    %128 = tpu.concatenate %109, %112, %115, %105, %118, %121, %124, %127 in 0 : vector<8x256xf32>, vector<8x256xf32>, vector<8x256xf32>, vector<8x256xf32>, vector<8x256xf32>, vector<8x256xf32>, vector<8x256xf32>, vector<8x256xf32> -> vector<64x256xf32>
    %cst = arith.constant dense<0.000000e+00> : vector<64x256xf32>
    %129 = tpu.matmul %106, %128, %cst {dimension_numbers = #tpu.dot_dimension_numbers<[1], [0], [0], [1], [0, 0, 1, 1], [], []>} : vector<64x64xf32>, vector<64x256xf32>, vector<64x256xf32> -> vector<64x256xf32>
    %130 = vector.broadcast %9 : vector<64x1xf32> to vector<64x256xf32>
    %131 = arith.mulf %129, %130 : vector<64x256xf32>
    %132 = vector.broadcast %10 : vector<64x1xf32> to vector<64x256xf32>
    %133 = arith.addf %131, %132 : vector<64x256xf32>
    %134 = vector.extract_strided_slice %133 {offsets = [0, 0], sizes = [32, 256], strides = [1, 1]} : vector<64x256xf32> to vector<32x256xf32>
    %cst_33 = arith.constant 0.000000e+00 : f32
    %135 = vector.broadcast %cst_33 : f32 to vector<32x256xf32>
    %136 = arith.maximumf %134, %135 : vector<32x256xf32>
    %137 = vector.extract_strided_slice %133 {offsets = [32, 0], sizes = [32, 256], strides = [1, 1]} : vector<64x256xf32> to vector<32x256xf32>
    %c0_34 = arith.constant 0 : index
    %c0_35 = arith.constant 0 : index
    %138 = vector.load %arg3[%c0_34, %c0_35] : memref<32x160xf32, #tpu.memory_space<vmem>>, vector<32x160xf32>
    %c2_i32_36 = arith.constant 2 : i32
    %139 = tpu.dynamic_rotate %136 by %c2_i32_36 dim 1 : vector<32x256xf32>, i32 -> vector<32x256xf32>
    %140 = vector.broadcast %49 : vector<1x256xf32> to vector<32x256xf32>
    %141 = arith.mulf %139, %140 : vector<32x256xf32>
    %c1_i32_37 = arith.constant 1 : i32
    %142 = tpu.dynamic_rotate %136 by %c1_i32_37 dim 1 : vector<32x256xf32>, i32 -> vector<32x256xf32>
    %143 = vector.broadcast %60 : vector<1x256xf32> to vector<32x256xf32>
    %144 = arith.mulf %142, %143 : vector<32x256xf32>
    %c255_i32_38 = arith.constant 255 : i32
    %145 = tpu.dynamic_rotate %136 by %c255_i32_38 dim 1 : vector<32x256xf32>, i32 -> vector<32x256xf32>
    %146 = vector.broadcast %71 : vector<1x256xf32> to vector<32x256xf32>
    %147 = arith.mulf %145, %146 : vector<32x256xf32>
    %c254_i32_39 = arith.constant 254 : i32
    %148 = tpu.dynamic_rotate %136 by %c254_i32_39 dim 1 : vector<32x256xf32>, i32 -> vector<32x256xf32>
    %149 = vector.broadcast %82 : vector<1x256xf32> to vector<32x256xf32>
    %150 = arith.mulf %148, %149 : vector<32x256xf32>
    %151 = tpu.concatenate %141, %144, %136, %147, %150 in 0 : vector<32x256xf32>, vector<32x256xf32>, vector<32x256xf32>, vector<32x256xf32>, vector<32x256xf32> -> vector<160x256xf32>
    %cst_40 = arith.constant dense<0.000000e+00> : vector<32x256xf32>
    %152 = tpu.matmul %138, %151, %cst_40 {dimension_numbers = #tpu.dot_dimension_numbers<[1], [0], [0], [1], [0, 0, 1, 1], [], []>} : vector<32x160xf32>, vector<160x256xf32>, vector<32x256xf32> -> vector<32x256xf32>
    %153 = vector.broadcast %3 : vector<32x1xf32> to vector<32x256xf32>
    %154 = arith.mulf %152, %153 : vector<32x256xf32>
    %155 = vector.broadcast %4 : vector<32x1xf32> to vector<32x256xf32>
    %156 = arith.addf %154, %155 : vector<32x256xf32>
    %cst_41 = arith.constant 0.000000e+00 : f32
    %157 = vector.broadcast %cst_41 : f32 to vector<32x256xf32>
    %158 = arith.maximumf %156, %157 : vector<32x256xf32>
    %c0_42 = arith.constant 0 : index
    %c0_43 = arith.constant 0 : index
    %159 = vector.load %arg4[%c0_42, %c0_43] : memref<32x96xf32, #tpu.memory_space<vmem>>, vector<32x96xf32>
    %c1_i32_44 = arith.constant 1 : i32
    %160 = tpu.dynamic_rotate %158 by %c1_i32_44 dim 1 : vector<32x256xf32>, i32 -> vector<32x256xf32>
    %161 = vector.broadcast %60 : vector<1x256xf32> to vector<32x256xf32>
    %162 = arith.mulf %160, %161 : vector<32x256xf32>
    %c255_i32_45 = arith.constant 255 : i32
    %163 = tpu.dynamic_rotate %158 by %c255_i32_45 dim 1 : vector<32x256xf32>, i32 -> vector<32x256xf32>
    %164 = vector.broadcast %71 : vector<1x256xf32> to vector<32x256xf32>
    %165 = arith.mulf %163, %164 : vector<32x256xf32>
    %166 = tpu.concatenate %162, %158, %165 in 0 : vector<32x256xf32>, vector<32x256xf32>, vector<32x256xf32> -> vector<96x256xf32>
    %cst_46 = arith.constant dense<0.000000e+00> : vector<32x256xf32>
    %167 = tpu.matmul %159, %166, %cst_46 {dimension_numbers = #tpu.dot_dimension_numbers<[1], [0], [0], [1], [0, 0, 1, 1], [], []>} : vector<32x96xf32>, vector<96x256xf32>, vector<32x256xf32> -> vector<32x256xf32>
    %168 = vector.broadcast %5 : vector<32x1xf32> to vector<32x256xf32>
    %169 = arith.mulf %167, %168 : vector<32x256xf32>
    %170 = vector.broadcast %6 : vector<32x1xf32> to vector<32x256xf32>
    %171 = arith.addf %169, %170 : vector<32x256xf32>
    %172 = arith.addf %171, %137 : vector<32x256xf32>
    %cst_47 = arith.constant 0.000000e+00 : f32
    %173 = vector.broadcast %cst_47 : f32 to vector<32x256xf32>
    %174 = arith.maximumf %172, %173 : vector<32x256xf32>
    %c0_48 = arith.constant 0 : index
    %c0_49 = arith.constant 0 : index
    %175 = vector.load %arg8[%c0_48, %c0_49] : memref<256x16xf32, #tpu.memory_space<vmem>>, vector<256x16xf32>
    %cst_50 = arith.constant dense<0.000000e+00> : vector<32x16xf32>
    %176 = tpu.matmul %174, %175, %cst_50 {dimension_numbers = #tpu.dot_dimension_numbers<[1], [0], [0], [1], [0, 0, 1, 1], [], []>} : vector<32x256xf32>, vector<256x16xf32>, vector<32x16xf32> -> vector<32x16xf32>
    %c0_51 = arith.constant 0 : index
    %c0_52 = arith.constant 0 : index
    %177 = vector.load %arg6[%c0_51, %c0_52] : memref<32x1xf32, #tpu.memory_space<vmem>>, vector<32x1xf32>
    %178 = vector.broadcast %177 : vector<32x1xf32> to vector<32x16xf32>
    %179 = arith.mulf %176, %178 : vector<32x16xf32>
    %cst_53 = arith.constant dense<0.000000e+00> : vector<16xf32>
    %180 = vector.multi_reduction <add>, %179, %cst_53 [0] : vector<32x16xf32> to vector<16xf32>
    %181 = vector.shape_cast %180 : vector<16xf32> to vector<1x16xf32>
    %c0_54 = arith.constant 0 : index
    %c0_55 = arith.constant 0 : index
    %182 = vector.load %arg7[%c0_54, %c0_55] : memref<1x1xf32, #tpu.memory_space<vmem>>, vector<1x1xf32>
    %183 = vector.broadcast %182 : vector<1x1xf32> to vector<1x16xf32>
    %184 = arith.addf %181, %183 : vector<1x16xf32>
    %185 = arith.negf %184 : vector<1x16xf32>
    %186 = math.exp %185 : vector<1x16xf32>
    %cst_56 = arith.constant 1.000000e+00 : f32
    %187 = vector.broadcast %cst_56 : f32 to vector<1x16xf32>
    %188 = arith.addf %187, %186 : vector<1x16xf32>
    %189 = arith.divf %187, %188 : vector<1x16xf32>
    %190 = vector.shape_cast %189 : vector<1x16xf32> to vector<1x16xf32>
    %191 = vector.broadcast %190 : vector<1x16xf32> to vector<8x16xf32>
    %c0_57 = arith.constant 0 : index
    %c0_58 = arith.constant 0 : index
    %c0_59 = arith.constant 0 : index
    %192 = vector.load %arg9[%c0_57, %c0_58, %c0_59] : memref<1x8x16xf32, #tpu.memory_space<vmem>>, vector<1x8x16xf32>
    %193 = vector.shape_cast %192 : vector<1x8x16xf32> to vector<8x16xf32>
    %194 = vector.shape_cast %191 : vector<8x16xf32> to vector<1x8x16xf32>
    tpu.vector_store %arg9[%c0_57, %c0_58, %c0_59], %194 {strides = array<i32>} : memref<1x8x16xf32, #tpu.memory_space<vmem>>, vector<1x8x16xf32>,
    return
  }
  func.func @transform_0(%arg0: i32) -> (i32, i32) {
    %c0_i32 = arith.constant 0 : i32
    %c0_i32_0 = arith.constant 0 : i32
    return %c0_i32, %arg0 : i32, i32
  }
  func.func @transform_1(%arg0: i32) -> (i32, i32) {
    %c0_i32 = arith.constant 0 : i32
    %c0_i32_0 = arith.constant 0 : i32
    %c0_i32_1 = arith.constant 0 : i32
    return %c0_i32, %c0_i32_0 : i32, i32
  }
  func.func @transform_2(%arg0: i32) -> (i32, i32) {
    %c0_i32 = arith.constant 0 : i32
    %c0_i32_0 = arith.constant 0 : i32
    %c0_i32_1 = arith.constant 0 : i32
    return %c0_i32, %c0_i32_0 : i32, i32
  }
  func.func @transform_3(%arg0: i32) -> (i32, i32) {
    %c0_i32 = arith.constant 0 : i32
    %c0_i32_0 = arith.constant 0 : i32
    %c0_i32_1 = arith.constant 0 : i32
    return %c0_i32, %c0_i32_0 : i32, i32
  }
  func.func @transform_4(%arg0: i32) -> (i32, i32) {
    %c0_i32 = arith.constant 0 : i32
    %c0_i32_0 = arith.constant 0 : i32
    %c0_i32_1 = arith.constant 0 : i32
    return %c0_i32, %c0_i32_0 : i32, i32
  }
  func.func @transform_5(%arg0: i32) -> (i32, i32) {
    %c0_i32 = arith.constant 0 : i32
    %c0_i32_0 = arith.constant 0 : i32
    %c0_i32_1 = arith.constant 0 : i32
    return %c0_i32, %c0_i32_0 : i32, i32
  }
  func.func @transform_6(%arg0: i32) -> (i32, i32) {
    %c0_i32 = arith.constant 0 : i32
    %c0_i32_0 = arith.constant 0 : i32
    %c0_i32_1 = arith.constant 0 : i32
    return %c0_i32, %c0_i32_0 : i32, i32
  }
  func.func @transform_7(%arg0: i32) -> (i32, i32) {
    %c0_i32 = arith.constant 0 : i32
    %c0_i32_0 = arith.constant 0 : i32
    %c0_i32_1 = arith.constant 0 : i32
    return %c0_i32, %c0_i32_0 : i32, i32
  }
  func.func @transform_8(%arg0: i32) -> (i32, i32, i32) {
    %c0_i32 = arith.constant 0 : i32
    %c0_i32_0 = arith.constant 0 : i32
    %c0_i32_1 = arith.constant 0 : i32
    return %arg0, %c0_i32, %c0_i32_0 : i32, i32, i32
  }
}

</mosaic_0001>

<bundles_post_ra>
// kernel: resnet_test_forward.1
= control target key start
LH: loop header
LB: loop body
LE: loop exit
PB: predicated region body
PF: predicated region fallthrough
CT: control target
= control target key end

     0   :  { %v1434_v1 = vmov 0.0   ;;  %s1435_s29 = smov 2   ;;  %s1436_s30 = smov 3   ;;  %v1442_v3 = vmov 0   ;;  %v1443_v6 = vmov 1   ;;  %v47_v9 = vlaneseq  ;;  %s2235_s0 = inlined_call_operand.vmem [shape: f32[8,256], index: 0, kind: input, shape index: {}]   ;;  %s2236_s4 = inlined_call_operand.vmem [shape: f32[32,8], index: 4, kind: input, shape index: {}]   ;;  %s2237_s1 = inlined_call_operand.vmem [shape: f32[64,64], index: 1, kind: input, shape index: {}]   ;;  %s2238_s2 = inlined_call_operand.vmem [shape: f32[32,160], index: 2, kind: input, shape index: {}]   ;;  %s2239_s3 = inlined_call_operand.vmem [shape: f32[32,96], index: 3, kind: input, shape index: {}]   ;;  %s2240_s7 = inlined_call_operand.vmem [shape: f32[256,16], index: 7, kind: input, shape index: {}]   ;;  %s2241_s5 = inlined_call_operand.vmem [shape: f32[32,1], index: 5, kind: input, shape index: {}]   ;;  %s2242_s6 = inlined_call_operand.<no memory space> [shape: f32[1,1], index: 6, kind: input, shape index: {}]   ;;  %s2243_s8 = inlined_call_operand.vmem [shape: f32[1,8,16], index: 8, kind: output, shape index: {}]  }
   0x1   :  { %v1497_v0 = vld [vmem:[%s2235_s0] sm:$0xff]  ;;  %320 = vmatprep.mubr.f32.mxu0 %v1434_v1  ;;  %v1506_v2 = vld [vmem:[%s2235_s0 + $0x8] sm:$0xff]  ;;  %s1437_s11 = smov 1   ;;  %s1438_s12 = smov 127   ;;  %1401 = vset.pattern.permute.xlu1 %v1442_v3  ;;  %v1548_v7 = vld [vmem:[%s2236_s4 + $0x10] sm:$0xff] }
   0x2   :  { %177 = vrot.lane.b32.xlu1 %v1497_v0, %s1435_s29  ;;  %168 = vrot.lane.b32.xlu0 %v1497_v0, %s1436_s30  ;;  %s1439_s0 = smov 126   ;;  %s1440_s13 = smov 125   ;;  %v1531_v4 = vld [vmem:[%s2236_s4 + $0x8] sm:$0xff]  ;;  %v1537_v5 = vld [vmem:[%s2236_s4] sm:$0xff]  ;;  %v1562_v10 = vand.u32 127, %v47_v9 }
   0x3   :  { %s1441_s14 = smov 124   ;;  %1400 = vset.pattern.permute.xlu0 %v1442_v3  ;;  %v1556_v8 = vld [vmem:[%s2236_s4 + $0x18] sm:$0xff] }
   0x4   :  { %v49_v11 = vadd.s32 128, %v1562_v10  ;;  %v1566_v12 = vand.u32 15, %v1562_v10  ;;  %vm181_vm4 = vcmp.lt.s32.totalorder %v1562_v10, 2  ;;  %vm172_vm5 = vcmp.lt.s32.totalorder %v1562_v10, 3 }
   0x5   :  { %vm190_vm8 = vcmp.lt.s32.totalorder %v1562_v10, 1  ;;  %vm199_vm11 = vcmp.lt.s32.totalorder %v1562_v10, 127  ;;  %vm208_vm14 = vcmp.lt.s32.totalorder %v1562_v10, 126 }
   0x6   :  { %179 = vrot.lane.b32.xlu1 %v1506_v2, %s1435_s29  ;;  %170 = vrot.lane.b32.xlu0 %v1506_v2, %s1436_s30  ;;  %v1568_v13 = vand.u32 15, %v49_v11  ;;  %v74_v14 = vadd.s32 4294967293, %v1566_v12  ;;  %v86_v17 = vadd.s32 4294967294, %v1566_v12  ;;  %v98_v18 = vadd.s32 4294967295, %v1566_v12 }
   0x7   :  { %v110_v38 = vadd.s32 1, %v1566_v12  ;;  %v122_v44 = vadd.s32 2, %v1566_v12  ;;  %v134_v56 = vadd.s32 3, %v1566_v12 }
   0x8   :  { %v75_v15 = vadd.s32 4294967293, %v1568_v13  ;;  %v87_v16 = vadd.s32 4294967294, %v1568_v13  ;;  %vm76_vm0 = vcmp.ge.s32.totalorder %v74_v14, 0  ;;  %v99_v21 = vadd.s32 4294967295, %v1568_v13 }
   0x9   :  { %vm88_vm3 = vcmp.ge.s32.totalorder %v86_v17, 0  ;;  %v1182_v22 = vsel %vm76_vm0, 1.0, %v1434_v1  ;;  %vm100_vm6 = vcmp.ge.s32.totalorder %v98_v18, 0  ;;  %v111_v39 = vadd.s32 1, %v1568_v13 }
   0xa   :  { %188 = vrot.lane.b32.xlu1 %v1506_v2, %s1437_s11  ;;  %186 = vrot.lane.b32.xlu0 %v1497_v0, %s1437_s11  ;;  %vm77_vm1 = vcmp.ge.s32.totalorder %v75_v15, 0  ;;  %vm89_vm2 = vcmp.ge.s32.totalorder %v87_v16, 0  ;;  %v1584_v25 = vsel %vm88_vm3, 1.0, %v1434_v1  ;;  %vm101_vm7 = vcmp.ge.s32.totalorder %v99_v21, 0 }
   0xb   :  { %v1183_v23 = vsel %vm77_vm1, 1.0, %v1434_v1  ;;  %v1581_v24 = vsel %vm89_vm2, 1.0, %v1434_v1  ;;  %v1594_v36 = vsel %vm100_vm6, 1.0, %v1434_v1  ;;  %v1597_v37 = vsel %vm101_vm7, 1.0, %v1434_v1 }
   0xc   :  { %v123_v45 = vadd.s32 2, %v1568_v13  ;;  %vm114_vm9 = vcmp.lt.s32.totalorder %v110_v38, 16  ;;  %vm115_vm10 = vcmp.lt.s32.totalorder %v111_v39, 16  ;;  %vm126_vm12 = vcmp.lt.s32.totalorder %v122_v44, 16  ;;  %v163_v44 = vld [vmem:[%s2237_s1 + $0x18] sm:$0xff] }
   0xd   :  { %v1614_v54 = vsel %vm114_vm9, 1.0, %v1434_v1  ;;  %v1617_v55 = vsel %vm115_vm10, 1.0, %v1434_v1  ;;  %v135_v57 = vadd.s32 3, %v1568_v13  ;;  %v1626_v60 = vsel %vm126_vm12, 1.0, %v1434_v1 }
   0xe   :  { %197 = vrot.lane.b32.xlu1 %v1506_v2, %s1438_s12  ;;  %195 = vrot.lane.b32.xlu0 %v1497_v0, %s1438_s12  ;;  %vm127_vm13 = vcmp.lt.s32.totalorder %v123_v45, 16  ;;  %vm138_vm15 = vcmp.lt.s32.totalorder %v134_v56, 16  ;;  %vm217_vm1 = vcmp.lt.s32.totalorder %v1562_v10, 125  ;;  %vm231_vm6 = vcmask 523264  }
   0xf   :  { %v1629_v61 = vsel %vm127_vm13, 1.0, %v1434_v1  ;;  %vm139_vm0 = vcmp.lt.s32.totalorder %v135_v57, 16  ;;  %v1192_v21 = vsel %vm138_vm15, 1.0, %v1434_v1  ;;  %vm609_vm7 = vcmask 261120  }
  0x12   :  { %206 = vrot.lane.b32.xlu1 %v1506_v2, %s1439_s0  ;;  %204 = vrot.lane.b32.xlu0 %v1497_v0, %s1439_s0 }
  0x16   :  { %215 = vrot.lane.b32.xlu1 %v1506_v2, %s1440_s13  ;;  %213 = vrot.lane.b32.xlu0 %v1497_v0, %s1440_s13 }
  0x1a   :  { %224 = vrot.lane.b32.xlu1 %v1506_v2, %s1441_s14  ;;  %222 = vrot.lane.b32.xlu0 %v1497_v0, %s1441_s14 }
  0x1e   :  { %374 = vperm.xlu1 %1401, %v1531_v4   ;;  %370 = vperm.xlu0 %1400, %v1537_v5  }
  0x22   :  { %1402 = vset.pattern.permute.xlu1 %v1443_v6  ;;  %1403 = vset.pattern.permute.xlu0 %v1443_v6 }
  0x23   :  { %418 = vperm.xlu1 %1402, %v1537_v5   ;;  %422 = vperm.xlu0 %1403, %v1531_v4  }
  0x27   :  { %1404 = vset.pattern.permute.xlu1 %v1442_v3  ;;  %426 = vperm.xlu0 %1403, %v1548_v7  }
  0x28   :  { %378 = vperm.xlu1 %1404, %v1548_v7  }
  0x2c   :  { %382 = vperm.xlu1 %1404, %v1556_v8  }
  0x30   :  { %1405 = vset.pattern.permute.xlu1 %v1443_v6 }
  0x31   :  { %430 = vperm.xlu1 %1405, %v1556_v8  }
  0x74   :  { %v178_v19 = vpop.permute.xlu1 %177  ;;  %v169_v20 = vpop.permute.xlu0 %168 }
  0x78   :  { %v180_v26 = vpop.permute.xlu1 %179  ;;  %v171_v27 = vpop.permute.xlu0 %170 }
  0x79   :  { %v183_v28 = vsel %vm181_vm4, %v180_v26, %v178_v19  ;;  %v173_v29 = vsel %vm172_vm5, %v169_v20, %v171_v27  ;;  %v174_v30 = vsel %vm172_vm5, %v171_v27, %v169_v20  ;;  %v182_v31 = vsel %vm181_vm4, %v178_v19, %v180_v26 }
  0x7a   :  { %v175_v32 = vmul.f32 %v1182_v22, %v174_v30  ;;  %v176_v33 = vmul.f32 %v1183_v23, %v173_v29  ;;  %v185_v34 = vmul.f32 %v1581_v24, %v182_v31  ;;  %v184_v35 = vmul.f32 %v1584_v25, %v183_v28 }
  0x7b   :  { %v1193_v22 = vsel %vm139_vm0, 1.0, %v1434_v1  ;;  %vm226_vm5 = vcmp.lt.s32.totalorder %v1562_v10, 124  ;;  %v767_v10 = vld [vmem:[%s2239_s3] sm:$0xff] }
  0x7c   :  { %v189_v40 = vpop.permute.xlu1 %188  ;;  %v187_v41 = vpop.permute.xlu0 %186  ;;  %v1257_v42 = vpack.c.bf16 %v185_v34, %v176_v33  ;;  %v1259_v43 = vpack.c.bf16 %v184_v35, %v175_v32 }
  0x7d   :  { %v191_v46 = vsel %vm190_vm8, %v187_v41, %v189_v40  ;;  %v192_v47 = vsel %vm190_vm8, %v189_v40, %v187_v41  ;;  %v160_v41 = vld [vmem:[%s2237_s1] sm:$0xff] }
  0x7e   :  { %v193_v48 = vmul.f32 %v1594_v36, %v192_v47  ;;  %v194_v49 = vmul.f32 %v1597_v37, %v191_v46  ;;  %1258 = vmatprep.subr.bf16.mxu0 %v1257_v42  ;;  %v161_v42 = vld [vmem:[%s2237_s1 + $0x8] sm:$0xff] }
  0x7f   :  { %1260 = vmatpush1.bf16.msra.mxu0 %v1259_v43  ;;  %v162_v43 = vld [vmem:[%s2237_s1 + $0x10] sm:$0xff] }
  0x80   :  { %v198_v50 = vpop.permute.xlu1 %197  ;;  %v196_v51 = vpop.permute.xlu0 %195  ;;  %v1261_v52 = vpack.c.bf16 %v1506_v2, %v194_v49  ;;  %v1263_v53 = vpack.c.bf16 %v1497_v0, %v193_v48  ;;  %v146_v0 = vadd.s32 4, %v1566_v12  ;;  %v147_v2 = vadd.s32 4, %v1568_v13 }
  0x81   :  { %v200_v58 = vsel %vm199_vm11, %v196_v51, %v198_v50  ;;  %v201_v59 = vsel %vm199_vm11, %v198_v50, %v196_v51 }
  0x82   :  { %1262 = vmatprep.subr.bf16.mxu0 %v1261_v52  ;;  %v202_v15 = vmul.f32 %v1614_v54, %v200_v58  ;;  %v203_v16 = vmul.f32 %v1617_v55, %v201_v59  ;;  %vm150_vm2 = vcmp.lt.s32.totalorder %v146_v0, 16  ;;  %vm151_vm3 = vcmp.lt.s32.totalorder %v147_v2, 16 }
  0x83   :  { %1264 = vmatpush1.bf16.msra.mxu0 %v1263_v53  ;;  %v1194_v27 = vsel %vm150_vm2, 1.0, %v1434_v1  ;;  %v1195_v28 = vsel %vm151_vm3, 1.0, %v1434_v1 }
  0x84   :  { %v207_v62 = vpop.permute.xlu1 %206  ;;  %v205_v63 = vpop.permute.xlu0 %204 }
  0x85   :  { %v209_v11 = vsel %vm208_vm14, %v205_v63, %v207_v62  ;;  %v210_v14 = vsel %vm208_vm14, %v207_v62, %v205_v63 }
  0x86   :  { %v211_v17 = vmul.f32 %v1626_v60, %v209_v11  ;;  %v212_v18 = vmul.f32 %v1629_v61, %v210_v14 }
  0x88   :  { %v216_v12 = vpop.permute.xlu1 %215  ;;  %v214_v13 = vpop.permute.xlu0 %213  ;;  %v1265_v19 = vpack.c.bf16 %v212_v18, %v203_v16  ;;  %v1267_v20 = vpack.c.bf16 %v211_v17, %v202_v15 }
  0x89   :  { %v218_v23 = vsel %vm217_vm1, %v214_v13, %v216_v12  ;;  %v219_v26 = vsel %vm217_vm1, %v216_v12, %v214_v13 }
  0x8a   :  { %1266 = vmatprep.subr.bf16.mxu0 %v1265_v19  ;;  %v220_v33 = vmul.f32 %v1192_v21, %v218_v23  ;;  %v221_v34 = vmul.f32 %v1193_v22, %v219_v26 }
  0x8b   :  { %1268 = vmatpush1.bf16.msra.mxu0 %v1267_v20 }
  0x8c   :  { %v225_v29 = vpop.permute.xlu1 %224  ;;  %v223_v30 = vpop.permute.xlu0 %222 }
  0x8d   :  { %v227_v31 = vsel %vm226_vm5, %v223_v30, %v225_v29  ;;  %v228_v32 = vsel %vm226_vm5, %v225_v29, %v223_v30 }
  0x8e   :  { %v229_v35 = vmul.f32 %v1194_v27, %v227_v31  ;;  %v230_v38 = vmul.f32 %v1195_v28, %v228_v32 }
  0x90   :  { %v1269_v39 = vpack.c.bf16 %v230_v38, %v221_v34  ;;  %v1271_v40 = vpack.c.bf16 %v229_v35, %v220_v33 }
  0x92   :  { %1270 = vmatprep.subr.bf16.mxu0 %v1269_v39 }
  0x93   :  { %1272 = vmatpush1.bf16.msra.mxu0 %v1271_v40 }
  0x96   :  { %1196 = vmatmul.mubr.msk.f32.vlgmr.msra.gmra.mrb[0].mxu0 %vm231_vm6, %v160_v41 }
  0x97   :  { %326 = vmatprep.mubr.f32.mxu0 %v1434_v1 }
  0x9a   :  { %1197 = vmatmul.mubr.msk.f32.gmra.mrb[2].mxu0 %vm231_vm6, %v161_v42  ;;  %v474_v42 = vld [vmem:[%s2238_s2 + $0x8] sm:$0xff] }
  0x9b   :  { %332 = vmatprep.mubr.f32.mxu0 %v1434_v1  ;;  %1204 = vmatprep.mubr.msk.f32.mxu1 %vm609_vm7, %v474_v42 }
  0x9d   :  { %v375_v45 = vpop.permute.xlu1 %374  ;;  %v371_v47 = vpop.permute.xlu0 %370 }
  0x9e   :  { %1198 = vmatmul.mubr.msk.f32.gmra.mrb[4].mxu0 %vm231_vm6, %v162_v43  ;;  %v1444_v43 = vmov 2  }
  0x9f   :  { %338 = vmatprep.mubr.f32.mxu0 %v1434_v1  ;;  %1407 = vset.pattern.permute.xlu1 %v1444_v43 }
  0xa0   :  { %1406 = vset.pattern.permute.xlu0 %v1444_v43 }
  0xa2   :  { %1199 = vmatmul.mubr.msk.f32.gmra.mrb[6].mxu0 %vm231_vm6, %v163_v44  ;;  %v419_v46 = vpop.permute.xlu1 %418  ;;  %v423_v58 = vpop.permute.xlu0 %422  ;;  %v1445_v44 = vmov 3  }
  0xa3   :  { %344 = vmatprep.mubr.f32.mxu0 %v1434_v1 }
  0xa6   :  { %v427_v20 = vpop.permute.xlu0 %426 }
  0xa7   :  { %v379_v49 = vpop.permute.xlu1 %378 }
  0xab   :  { %v383_v2 = vpop.permute.xlu1 %382 }
  0xb0   :  { %v431_v23 = vpop.permute.xlu1 %430 }
 0x169   :  { %v322_v48 = vpop.f32.mrb[0].mxu0 }
 0x16a   :  { %v401_v50 = vmul.f32 %v371_v47, %v322_v48  ;;  %v324_v51 = vpop.f32.mrb[1].mxu0 }
 0x16b   :  { %v402_v52 = vmul.f32 %v371_v47, %v324_v51 }
 0x16c   :  { %v449_v53 = vadd.f32 %v419_v46, %v401_v50 }
 0x16d   :  { %v328_v56 = vpop.f32.mrb[2].mxu0  ;;  %v450_v63 = vadd.f32 %v419_v46, %v402_v52 }
 0x16e   :  { %v1667_v57 = vmax.f32 %v449_v53, 0.0  ;;  %v403_v59 = vmul.f32 %v375_v45, %v328_v56  ;;  %v330_v62 = vpop.f32.mrb[3].mxu0 }
 0x16f   :  { %v404_v0 = vmul.f32 %v375_v45, %v330_v62  ;;  %v1673_v12 = vmax.f32 %v450_v63, 0.0 }
 0x170   :  { %v451_v11 = vadd.f32 %v423_v58, %v403_v59  ;;  %481 = vrot.lane.b32.xlu0 %v1667_v57, %s1435_s29 }
 0x171   :  { %v452_v14 = vadd.f32 %v423_v58, %v404_v0  ;;  %v334_v15 = vpop.f32.mrb[4].mxu0 }
 0x172   :  { %v1671_v16 = vmax.f32 %v451_v11, 0.0  ;;  %v405_v17 = vmul.f32 %v379_v49, %v334_v15  ;;  %v336_v18 = vpop.f32.mrb[5].mxu0 }
 0x173   :  { %v1675_v13 = vmax.f32 %v452_v14, 0.0  ;;  %v406_v19 = vmul.f32 %v379_v49, %v336_v18 }
 0x174   :  { %513 = vrot.lane.b32.xlu0 %v1667_v57, %s1437_s11  ;;  %483 = vrot.lane.b32.xlu1 %v1671_v16, %s1435_s29  ;;  %v1291_v21 = vpack.c.bf16 %v1671_v16, %v1667_v57  ;;  %v453_v27 = vadd.f32 %v427_v20, %v405_v17 }
 0x175   :  { %v340_v22 = vpop.f32.mrb[6].mxu0  ;;  %v1289_v26 = vpack.c.bf16 %v1675_v13, %v1673_v12  ;;  %v454_v30 = vadd.f32 %v427_v20, %v406_v19 }
 0x176   :  { %v407_v28 = vmul.f32 %v383_v2, %v340_v22  ;;  %v342_v29 = vpop.f32.mrb[7].mxu0  ;;  %v1689_v34 = vmax.f32 %v453_v27, 0.0 }
 0x177   :  { %v408_v31 = vmul.f32 %v383_v2, %v342_v29  ;;  %v1693_v38 = vmax.f32 %v454_v30, 0.0 }
 0x178   :  { %v455_v32 = vadd.f32 %v431_v23, %v407_v28  ;;  %545 = vrot.lane.b32.xlu0 %v1667_v57, %s1438_s12  ;;  %515 = vrot.lane.b32.xlu1 %v1671_v16, %s1437_s11 }
 0x179   :  { %v456_v33 = vadd.f32 %v431_v23, %v408_v31 }
 0x17a   :  { %v1691_v35 = vmax.f32 %v455_v32, 0.0 }
 0x17b   :  { %v1695_v39 = vmax.f32 %v456_v33, 0.0 }
 0x17c   :  { %489 = vrot.lane.b32.xlu0 %v1673_v12, %s1435_s29  ;;  %547 = vrot.lane.b32.xlu1 %v1671_v16, %s1438_s12  ;;  %v1295_v40 = vpack.c.bf16 %v1691_v35, %v1689_v34 }
 0x17d   :  { %v1293_v41 = vpack.c.bf16 %v1695_v39, %v1693_v38 }
 0x180   :  { %521 = vrot.lane.b32.xlu0 %v1673_v12, %s1437_s11  ;;  %491 = vrot.lane.b32.xlu1 %v1675_v13, %s1435_s29 }
 0x184   :  { %523 = vrot.lane.b32.xlu1 %v1675_v13, %s1437_s11  ;;  %485 = vrot.lane.b32.xlu0 %v1689_v34, %s1435_s29 }
 0x188   :  { %487 = vrot.lane.b32.xlu1 %v1691_v35, %s1435_s29  ;;  %517 = vrot.lane.b32.xlu0 %v1689_v34, %s1437_s11 }
 0x18c   :  { %519 = vrot.lane.b32.xlu1 %v1691_v35, %s1437_s11  ;;  %493 = vrot.lane.b32.xlu0 %v1693_v38, %s1435_s29 }
 0x190   :  { %495 = vrot.lane.b32.xlu1 %v1695_v39, %s1435_s29  ;;  %553 = vrot.lane.b32.xlu0 %v1673_v12, %s1438_s12 }
 0x194   :  { %555 = vrot.lane.b32.xlu1 %v1675_v13, %s1438_s12  ;;  %525 = vrot.lane.b32.xlu0 %v1693_v38, %s1437_s11 }
 0x198   :  { %527 = vrot.lane.b32.xlu1 %v1695_v39, %s1437_s11  ;;  %549 = vrot.lane.b32.xlu0 %v1689_v34, %s1438_s12 }
 0x19c   :  { %551 = vrot.lane.b32.xlu1 %v1691_v35, %s1438_s12  ;;  %557 = vrot.lane.b32.xlu0 %v1693_v38, %s1438_s12 }
 0x1a0   :  { %579 = vrot.lane.b32.xlu1 %v1671_v16, %s1439_s0  ;;  %577 = vrot.lane.b32.xlu0 %v1667_v57, %s1439_s0 }
 0x1a4   :  { %587 = vrot.lane.b32.xlu1 %v1675_v13, %s1439_s0  ;;  %585 = vrot.lane.b32.xlu0 %v1673_v12, %s1439_s0 }
 0x1a8   :  { %559 = vrot.lane.b32.xlu1 %v1695_v39, %s1438_s12  ;;  %581 = vrot.lane.b32.xlu0 %v1689_v34, %s1439_s0 }
 0x1ac   :  { %583 = vrot.lane.b32.xlu1 %v1691_v35, %s1439_s0  ;;  %589 = vrot.lane.b32.xlu0 %v1693_v38, %s1439_s0 }
 0x1b0   :  { %591 = vrot.lane.b32.xlu1 %v1695_v39, %s1439_s0  ;;  %712 = vperm.xlu0 %1406, %v1537_v5  }
 0x1b4   :  { %716 = vperm.xlu1 %1407, %v1531_v4   ;;  %1409 = vset.pattern.permute.xlu0 %v1445_v44 }
 0x1b5   :  { %740 = vperm.xlu0 %1409, %v1531_v4  }
 0x1b8   :  { %1408 = vset.pattern.permute.xlu1 %v1445_v44 }
 0x1b9   :  { %736 = vperm.xlu1 %1408, %v1537_v5   ;;  %744 = vperm.xlu0 %1409, %v1548_v7  }
 0x1bd   :  { %1410 = vset.pattern.permute.xlu1 %v1444_v43 }
 0x1be   :  { %720 = vperm.xlu1 %1410, %v1548_v7  }
 0x1c2   :  { %724 = vperm.xlu1 %1410, %v1556_v8  }
 0x1c6   :  { %1411 = vset.pattern.permute.xlu1 %v1445_v44 }
 0x1c7   :  { %748 = vperm.xlu1 %1411, %v1556_v8  }
 0x1e2   :  { %v482_v45 = vpop.permute.xlu0 %481 }
 0x1e6   :  { %v484_v46 = vpop.permute.xlu1 %483  ;;  %v514_v47 = vpop.permute.xlu0 %513 }
 0x1ea   :  { %v516_v48 = vpop.permute.xlu1 %515  ;;  %v1767_v49 = vpop.permute.xlu0 %545 }
 0x1ee   :  { %v1769_v50 = vpop.permute.xlu1 %547  ;;  %v490_v51 = vpop.permute.xlu0 %489 }
 0x1ef   :  { %v497_v52 = vsel %vm181_vm4, %v482_v45, %v490_v51  ;;  %v501_v53 = vsel %vm181_vm4, %v490_v51, %v482_v45 }
 0x1f0   :  { %v505_v63 = vmul.f32 %v1584_v25, %v501_v53  ;;  %v506_v2 = vmul.f32 %v1581_v24, %v497_v52 }
 0x1f2   :  { %v492_v56 = vpop.permute.xlu1 %491  ;;  %v522_v58 = vpop.permute.xlu0 %521 }
 0x1f3   :  { %v498_v59 = vsel %vm181_vm4, %v484_v46, %v492_v56  ;;  %v502_v62 = vsel %vm181_vm4, %v492_v56, %v484_v46  ;;  %v529_v30 = vsel %vm190_vm8, %v514_v47, %v522_v58  ;;  %v533_v53 = vsel %vm190_vm8, %v522_v58, %v514_v47 }
 0x1f4   :  { %v507_v0 = vmul.f32 %v1584_v25, %v502_v62  ;;  %v508_v11 = vmul.f32 %v1581_v24, %v498_v59 }
 0x1f6   :  { %v524_v14 = vpop.permute.xlu1 %523  ;;  %v486_v15 = vpop.permute.xlu0 %485  ;;  %v1273_v17 = vpack.c.bf16 %v508_v11, %v506_v2  ;;  %v1275_v18 = vpack.c.bf16 %v507_v0, %v505_v63  ;;  %v537_v11 = vmul.f32 %v1594_v36, %v533_v53 }
 0x1f7   :  { %v530_v27 = vsel %vm190_vm8, %v516_v48, %v524_v14  ;;  %v534_v33 = vsel %vm190_vm8, %v524_v14, %v516_v48  ;;  %v538_v48 = vmul.f32 %v1597_v37, %v529_v30 }
 0x1f8   :  { %1274 = vmatprep.subr.bf16.mxu1 %v1273_v17  ;;  %v540_v42 = vmul.f32 %v1597_v37, %v530_v27  ;;  %v539_v0 = vmul.f32 %v1594_v36, %v534_v33 }
 0x1f9   :  { %1276 = vmatpush1.bf16.msra.mxu1 %v1275_v18 }
 0x1fa   :  { %v488_v19 = vpop.permute.xlu1 %487  ;;  %v518_v20 = vpop.permute.xlu0 %517  ;;  %v1281_v2 = vpack.c.bf16 %v540_v42, %v538_v48  ;;  %v1283_v17 = vpack.c.bf16 %v539_v0, %v537_v11 }
 0x1fe   :  { %v520_v22 = vpop.permute.xlu1 %519  ;;  %v494_v23 = vpop.permute.xlu0 %493 }
 0x1ff   :  { %v499_v28 = vsel %vm181_vm4, %v486_v15, %v494_v23  ;;  %v503_v29 = vsel %vm181_vm4, %v494_v23, %v486_v15 }
 0x200   :  { %v509_v45 = vmul.f32 %v1584_v25, %v503_v29  ;;  %v510_v46 = vmul.f32 %v1581_v24, %v499_v28 }
 0x202   :  { %v496_v31 = vpop.permute.xlu1 %495  ;;  %v554_v32 = vpop.permute.xlu0 %553 }
 0x203   :  { %v500_v43 = vsel %vm181_vm4, %v488_v19, %v496_v31  ;;  %v504_v44 = vsel %vm181_vm4, %v496_v31, %v488_v19  ;;  %v565_v42 = vsel %vm199_vm11, %v554_v32, %v1767_v49  ;;  %vm835_vm4 = vcmask 785408  }
 0x204   :  { %v511_v51 = vmul.f32 %v1584_v25, %v504_v44  ;;  %v512_v52 = vmul.f32 %v1581_v24, %v500_v43  ;;  %v570_v12 = vmul.f32 %v1617_v55, %v565_v42  ;;  %v480_v42 = vld [vmem:[%s2238_s2 + $0x38] sm:$0xff] }
 0x206   :  { %v556_v56 = vpop.permute.xlu1 %555  ;;  %v526_v59 = vpop.permute.xlu0 %525  ;;  %v1277_v62 = vpack.c.bf16 %v512_v52, %v510_v46  ;;  %v1279_v63 = vpack.c.bf16 %v511_v51, %v509_v45  ;;  %v561_v45 = vsel %vm199_vm11, %v1767_v49, %v554_v32 }
 0x207   :  { %v531_v25 = vsel %vm190_vm8, %v518_v20, %v526_v59  ;;  %v535_v24 = vsel %vm190_vm8, %v526_v59, %v518_v20  ;;  %v566_v31 = vsel %vm199_vm11, %v556_v56, %v1769_v50  ;;  %v562_v43 = vsel %vm199_vm11, %v1769_v50, %v556_v56 }
 0x208   :  { %1278 = vmatprep.subr.bf16.mxu1 %v1277_v62  ;;  %v541_v18 = vmul.f32 %v1594_v36, %v535_v24  ;;  %v542_v19 = vmul.f32 %v1597_v37, %v531_v25  ;;  %v572_v44 = vmul.f32 %v1617_v55, %v566_v31  ;;  %v571_v13 = vmul.f32 %v1614_v54, %v562_v43  ;;  %v473_v31 = vld [vmem:[%s2238_s2] sm:$0xff]  ;;  %v479_v43 = vld [vmem:[%s2238_s2 + $0x30] sm:$0xff] }
 0x209   :  { %1280 = vmatpush1.bf16.msra.mxu1 %v1279_v63  ;;  %v569_v32 = vmul.f32 %v1614_v54, %v561_v45 }
 0x20a   :  { %v528_v47 = vpop.permute.xlu1 %527  ;;  %1282 = vmatprep.subr.bf16.mxu1 %v1281_v2  ;;  %v550_v58 = vpop.permute.xlu0 %549  ;;  %v1297_v57 = vpack.c.bf16 %v572_v44, %v570_v12 }
 0x20b   :  { %v532_v14 = vsel %vm190_vm8, %v520_v22, %v528_v47  ;;  %v536_v15 = vsel %vm190_vm8, %v528_v47, %v520_v22  ;;  %v1299_v52 = vpack.c.bf16 %v571_v13, %v569_v32 }
 0x20c   :  { %v543_v23 = vmul.f32 %v1594_v36, %v536_v15  ;;  %v544_v27 = vmul.f32 %v1597_v37, %v532_v14 }
 0x20d   :  { %1284 = vmatpush1.bf16.msra.mxu1 %v1283_v17 }
 0x20e   :  { %v552_v20 = vpop.permute.xlu1 %551  ;;  %v558_v28 = vpop.permute.xlu0 %557  ;;  %v1285_v29 = vpack.c.bf16 %v544_v27, %v542_v19  ;;  %v1287_v30 = vpack.c.bf16 %v543_v23, %v541_v18 }
 0x20f   :  { %v563_v46 = vsel %vm199_vm11, %v550_v58, %v558_v28  ;;  %v567_v49 = vsel %vm199_vm11, %v558_v28, %v550_v58 }
 0x210   :  { %1286 = vmatprep.subr.bf16.mxu1 %v1285_v29  ;;  %v573_v38 = vmul.f32 %v1614_v54, %v563_v46  ;;  %v574_v39 = vmul.f32 %v1617_v55, %v567_v49 }
 0x211   :  { %1288 = vmatpush1.bf16.msra.mxu1 %v1287_v30 }
 0x212   :  { %v580_v22 = vpop.permute.xlu1 %579  ;;  %1290 = vmatprep.subr.bf16.mxu1 %v1289_v26  ;;  %v578_v33 = vpop.permute.xlu0 %577 }
 0x215   :  { %1292 = vmatpush1.bf16.msra.mxu1 %v1291_v21 }
 0x216   :  { %v588_v26 = vpop.permute.xlu1 %587  ;;  %1294 = vmatprep.subr.bf16.mxu1 %v1293_v41  ;;  %v586_v50 = vpop.permute.xlu0 %585 }
 0x217   :  { %v598_v16 = vsel %vm208_vm14, %v588_v26, %v580_v22  ;;  %v597_v21 = vsel %vm208_vm14, %v586_v50, %v578_v33  ;;  %v594_v53 = vsel %vm208_vm14, %v580_v22, %v588_v26  ;;  %v593_v48 = vsel %vm208_vm14, %v578_v33, %v586_v50  ;;  %v476_v22 = vld [vmem:[%s2238_s2 + $0x18] sm:$0xff]  ;;  %v477_v33 = vld [vmem:[%s2238_s2 + $0x20] sm:$0xff] }
 0x218   :  { %v604_v35 = vmul.f32 %v1629_v61, %v598_v16  ;;  %v603_v25 = vmul.f32 %v1626_v60, %v594_v53  ;;  %v601_v24 = vmul.f32 %v1626_v60, %v593_v48 }
 0x219   :  { %1296 = vmatpush1.bf16.msra.mxu1 %v1295_v40  ;;  %v602_v40 = vmul.f32 %v1629_v61, %v597_v21  ;;  %v164_v21 = vld [vmem:[%s2237_s1 + $0x20] sm:$0xff] }
 0x21a   :  { %v560_v41 = vpop.permute.xlu1 %559  ;;  %1298 = vmatprep.subr.bf16.mxu1 %v1297_v57  ;;  %v582_v51 = vpop.permute.xlu0 %581  ;;  %v1307_v19 = vpack.c.bf16 %v603_v25, %v601_v24  ;;  %1200 = vmatmul.mubr.msk.f32.gmra.mrb[8].mxu0 %vm231_vm6, %v164_v21 }
 0x21b   :  { %v564_v56 = vsel %vm199_vm11, %v552_v20, %v560_v41  ;;  %v568_v34 = vsel %vm199_vm11, %v560_v41, %v552_v20  ;;  %v1305_v47 = vpack.c.bf16 %v604_v35, %v602_v40  ;;  %350 = vmatprep.mubr.f32.mxu0 %v1434_v1  ;;  %v165_v35 = vld [vmem:[%s2237_s1 + $0x28] sm:$0xff] }
 0x21c   :  { %v575_v59 = vmul.f32 %v1614_v54, %v564_v56  ;;  %v576_v62 = vmul.f32 %v1617_v55, %v568_v34 }
 0x21d   :  { %1300 = vmatpush1.bf16.msra.mxu1 %v1299_v52 }
 0x21e   :  { %v584_v63 = vpop.permute.xlu1 %583  ;;  %v590_v0 = vpop.permute.xlu0 %589  ;;  %v1301_v2 = vpack.c.bf16 %v576_v62, %v574_v39  ;;  %v1303_v11 = vpack.c.bf16 %v575_v59, %v573_v38  ;;  %1201 = vmatmul.mubr.msk.f32.gmra.mrb[10].mxu0 %vm231_vm6, %v165_v35 }
 0x21f   :  { %v595_v58 = vsel %vm208_vm14, %v582_v51, %v590_v0  ;;  %v599_v14 = vsel %vm208_vm14, %v590_v0, %v582_v51  ;;  %356 = vmatprep.mubr.f32.mxu0 %v1434_v1 }
 0x220   :  { %1302 = vmatprep.subr.bf16.mxu1 %v1301_v2  ;;  %v605_v23 = vmul.f32 %v1626_v60, %v595_v58  ;;  %v606_v27 = vmul.f32 %v1629_v61, %v599_v14 }
 0x221   :  { %1304 = vmatpush1.bf16.msra.mxu1 %v1303_v11 }
 0x222   :  { %v592_v15 = vpop.permute.xlu1 %591  ;;  %1306 = vmatprep.subr.bf16.mxu1 %v1305_v47 }
 0x223   :  { %v596_v17 = vsel %vm208_vm14, %v584_v63, %v592_v15  ;;  %v600_v18 = vsel %vm208_vm14, %v592_v15, %v584_v63 }
 0x224   :  { %v607_v20 = vmul.f32 %v1626_v60, %v596_v17  ;;  %v608_v28 = vmul.f32 %v1629_v61, %v600_v18  ;;  %v475_v60 = vld [vmem:[%s2238_s2 + $0x10] sm:$0xff]  ;;  %v478_v61 = vld [vmem:[%s2238_s2 + $0x28] sm:$0xff] }
 0x225   :  { %1308 = vmatpush1.bf16.msra.mxu1 %v1307_v19 }
 0x226   :  { %v1309_v29 = vpack.c.bf16 %v608_v28, %v606_v27  ;;  %v1311_v30 = vpack.c.bf16 %v607_v20, %v605_v23  ;;  %v166_v20 = vld [vmem:[%s2237_s1 + $0x30] sm:$0xff] }
 0x227   :  { %1202 = vmatmul.mubr.msk.f32.gmra.mrb[12].mxu0 %vm231_vm6, %v166_v20 }
 0x228   :  { %1310 = vmatprep.subr.bf16.mxu1 %v1309_v29  ;;  %362 = vmatprep.mubr.f32.mxu0 %v1434_v1 }
 0x229   :  { %1312 = vmatpush1.bf16.msra.mxu1 %v1311_v30 }
 0x22c   :  { %687 = vmatmul.mubr.f32.vlgmr.msra.gmra.mrb[0].mxu1 %v473_v31 }
 0x22d   :  { %1205 = vmatprep.mubr.msk.f32.mxu1 %vm609_vm7, %v476_v22 }
 0x22f   :  { %v713_v12 = vpop.permute.xlu0 %712 }
 0x230   :  { %693 = vmatmul.mubr.f32.gmra.mrb[2].mxu1 %v475_v60 }
 0x231   :  { %1206 = vmatprep.mubr.msk.f32.mxu1 %vm609_vm7, %v478_v61  ;;  %v167_v61 = vld [vmem:[%s2237_s1 + $0x38] sm:$0xff]  ;;  %s1446_s1 = smov 122  }
 0x232   :  { %1203 = vmatmul.mubr.msk.f32.gmra.mrb[14].mxu0 %vm231_vm6, %v167_v61 }
 0x233   :  { %v717_v44 = vpop.permute.xlu1 %716  ;;  %912 = vmatprep.mubr.f32.mxu0 %v1434_v1 }
 0x234   :  { %699 = vmatmul.mubr.f32.gmra.mrb[4].mxu1 %v477_v33  ;;  %v741_v57 = vpop.permute.xlu0 %740  ;;  %v1447_v33 = vmov 4  }
 0x235   :  { %1207 = vmatprep.mubr.msk.f32.mxu1 %vm609_vm7, %v480_v42  ;;  %1412 = vset.pattern.permute.xlu1 %v1447_v33  ;;  %v1448_v42 = vmov 5  }
 0x236   :  { %1414 = vset.pattern.permute.xlu0 %v1448_v42 }
 0x238   :  { %705 = vmatmul.mubr.f32.gmra.mrb[6].mxu1 %v479_v43  ;;  %v737_v45 = vpop.permute.xlu1 %736  ;;  %v745_v2 = vpop.permute.xlu0 %744 }
 0x23d   :  { %v721_v46 = vpop.permute.xlu1 %720 }
 0x241   :  { %v725_v48 = vpop.permute.xlu1 %724 }
 0x246   :  { %v749_v58 = vpop.permute.xlu1 %748 }
 0x2ff   :  { %v688_v13 = vpop.f32.mrb[0].mxu1 }
 0x300   :  { %v727_v26 = vmul.f32 %v713_v12, %v688_v13  ;;  %v690_v50 = vpop.f32.mrb[1].mxu1 }
 0x301   :  { %v728_v49 = vmul.f32 %v713_v12, %v690_v50 }
 0x302   :  { %v751_v32 = vadd.f32 %v737_v45, %v727_v26 }
 0x303   :  { %v694_v16 = vpop.f32.mrb[2].mxu1  ;;  %v752_v39 = vadd.f32 %v737_v45, %v728_v49 }
 0x304   :  { %v1910_v38 = vmax.f32 %v751_v32, 0.0  ;;  %v729_v41 = vmul.f32 %v717_v44, %v694_v16  ;;  %v696_v51 = vpop.f32.mrb[3].mxu1 }
 0x305   :  { %v730_v52 = vmul.f32 %v717_v44, %v696_v51  ;;  %v1919_v40 = vmax.f32 %v752_v39, 0.0 }
 0x306   :  { %v753_v53 = vadd.f32 %v741_v57, %v729_v41  ;;  %771 = vrot.lane.b32.xlu0 %v1910_v38, %s1437_s11 }
 0x307   :  { %v754_v56 = vadd.f32 %v741_v57, %v730_v52  ;;  %v700_v34 = vpop.f32.mrb[4].mxu1 }
 0x308   :  { %v1921_v59 = vmax.f32 %v753_v53, 0.0  ;;  %v731_v62 = vmul.f32 %v721_v46, %v700_v34  ;;  %v702_v63 = vpop.f32.mrb[5].mxu1 }
 0x309   :  { %v1924_v0 = vmax.f32 %v754_v56, 0.0  ;;  %v732_v11 = vmul.f32 %v721_v46, %v702_v63 }
 0x30a   :  { %v755_v25 = vadd.f32 %v745_v2, %v731_v62  ;;  %779 = vrot.lane.b32.xlu0 %v1919_v40, %s1437_s11  ;;  %773 = vrot.lane.b32.xlu1 %v1921_v59, %s1437_s11  ;;  %v1323_v24 = vpack.c.bf16 %v1921_v59, %v1910_v38 }
 0x30b   :  { %v706_v47 = vpop.f32.mrb[6].mxu1  ;;  %v1321_v14 = vpack.c.bf16 %v1924_v0, %v1919_v40  ;;  %v756_v17 = vadd.f32 %v745_v2, %v732_v11 }
 0x30c   :  { %v1935_v15 = vmax.f32 %v755_v25, 0.0  ;;  %v733_v18 = vmul.f32 %v725_v48, %v706_v47  ;;  %v708_v19 = vpop.f32.mrb[7].mxu1 }
 0x30d   :  { %v734_v23 = vmul.f32 %v725_v48, %v708_v19  ;;  %v1945_v29 = vmax.f32 %v756_v17, 0.0 }
 0x30e   :  { %v757_v27 = vadd.f32 %v749_v58, %v733_v18  ;;  %781 = vrot.lane.b32.xlu1 %v1924_v0, %s1437_s11  ;;  %775 = vrot.lane.b32.xlu0 %v1935_v15, %s1437_s11 }
 0x30f   :  { %v758_v28 = vadd.f32 %v749_v58, %v734_v23 }
 0x310   :  { %v1947_v30 = vmax.f32 %v757_v27, 0.0 }
 0x311   :  { %v1950_v31 = vmax.f32 %v758_v28, 0.0 }
 0x312   :  { %v1327_v22 = vpack.c.bf16 %v1947_v30, %v1935_v15  ;;  %777 = vrot.lane.b32.xlu1 %v1947_v30, %s1437_s11  ;;  %783 = vrot.lane.b32.xlu0 %v1945_v29, %s1437_s11 }
 0x313   :  { %v1325_v60 = vpack.c.bf16 %v1950_v31, %v1945_v29 }
 0x316   :  { %785 = vrot.lane.b32.xlu1 %v1950_v31, %s1437_s11  ;;  %803 = vrot.lane.b32.xlu0 %v1910_v38, %s1438_s12 }
 0x31a   :  { %805 = vrot.lane.b32.xlu1 %v1921_v59, %s1438_s12  ;;  %811 = vrot.lane.b32.xlu0 %v1919_v40, %s1438_s12 }
 0x31e   :  { %813 = vrot.lane.b32.xlu1 %v1924_v0, %s1438_s12  ;;  %807 = vrot.lane.b32.xlu0 %v1935_v15, %s1438_s12 }
 0x322   :  { %809 = vrot.lane.b32.xlu1 %v1947_v30, %s1438_s12  ;;  %815 = vrot.lane.b32.xlu0 %v1945_v29, %s1438_s12 }
 0x326   :  { %817 = vrot.lane.b32.xlu1 %v1950_v31, %s1438_s12  ;;  %41 = vrot.lane.b32.xlu0 %v1531_v4, %s1446_s1 }
 0x32a   :  { %39 = vrot.lane.b32.xlu1 %v1537_v5, %s1446_s1  ;;  %43 = vrot.lane.b32.xlu0 %v1548_v7, %s1446_s1 }
 0x32e   :  { %45 = vrot.lane.b32.xlu1 %v1556_v8, %s1446_s1  ;;  %966 = vperm.xlu0 %1414, %v1531_v4  }
 0x332   :  { %942 = vperm.xlu1 %1412, %v1531_v4   ;;  %1416 = vset.pattern.permute.xlu0 %v1447_v33 }
 0x333   :  { %938 = vperm.xlu0 %1416, %v1537_v5  }
 0x336   :  { %1413 = vset.pattern.permute.xlu1 %v1443_v6 }
 0x337   :  { %1419 = vset.pattern.permute.xlu0 %v1443_v6 }
 0x378   :  { %v772_v7 = vpop.permute.xlu0 %771 }
 0x37c   :  { %v774_v8 = vpop.permute.xlu1 %773  ;;  %v780_v43 = vpop.permute.xlu0 %779 }
 0x37d   :  { %v787_v44 = vsel %vm190_vm8, %v772_v7, %v780_v43  ;;  %v791_v45 = vsel %vm190_vm8, %v780_v43, %v772_v7 }
 0x37e   :  { %v795_v26 = vmul.f32 %v1594_v36, %v791_v45  ;;  %v796_v50 = vmul.f32 %v1597_v37, %v787_v44  ;;  %v1001_v45 = vld [vmem:[%s2240_s7] sm:$0xff] }
 0x380   :  { %v782_v12 = vpop.permute.xlu1 %781  ;;  %v776_v13 = vpop.permute.xlu0 %775 }
 0x381   :  { %v788_v4 = vsel %vm190_vm8, %v774_v8, %v782_v12  ;;  %v792_v5 = vsel %vm190_vm8, %v782_v12, %v774_v8 }
 0x382   :  { %v797_v46 = vmul.f32 %v1594_v36, %v792_v5  ;;  %v798_v49 = vmul.f32 %v1597_v37, %v788_v4  ;;  %v768_v5 = vld [vmem:[%s2239_s3 + $0x8] sm:$0xff] }
 0x384   :  { %v1315_v32 = vpack.c.bf16 %v797_v46, %v795_v26  ;;  %v778_v57 = vpop.permute.xlu1 %777  ;;  %v784_v16 = vpop.permute.xlu0 %783  ;;  %v1313_v21 = vpack.c.bf16 %v798_v49, %v796_v50  ;;  %v1019_v50 = vld [vmem:[%s2240_s7 + $0x90] sm:$0xff]  ;;  %v1020_v46 = vld [vmem:[%s2240_s7 + $0x98] sm:$0xff] }
 0x385   :  { %v789_v39 = vsel %vm190_vm8, %v776_v13, %v784_v16  ;;  %v793_v41 = vsel %vm190_vm8, %v784_v16, %v776_v13  ;;  %v1002_v13 = vld [vmem:[%s2240_s7 + $0x8] sm:$0xff]  ;;  %v1003_v49 = vld [vmem:[%s2240_s7 + $0x10] sm:$0xff]  ;;  %v1021_v16 = vld [vmem:[%s2240_s7 + $0xa0] sm:$0xff] }
 0x386   :  { %1314 = vmatprep.subr.bf16.mxu0 %v1313_v21  ;;  %v799_v56 = vmul.f32 %v1594_v36, %v793_v41  ;;  %v800_v34 = vmul.f32 %v1597_v37, %v789_v39  ;;  %v1339_v4 = vpack.c.bf16 %v1002_v13, %v1001_v45  ;;  %v1022_v21 = vld [vmem:[%s2240_s7 + $0xa8] sm:$0xff]  ;;  %v769_v39 = vld [vmem:[%s2239_s3 + $0x10] sm:$0xff]  ;;  %v1121_v13 = vld [vmem:[%s2241_s5 + $0x18] sm:$0xff] }
 0x387   :  { %1316 = vmatpush1.bf16.msra.mxu0 %v1315_v32  ;;  %v1341_v32 = vpack.c.bf16 %v1020_v46, %v1019_v50  ;;  %v1431_v41 = vld [vmem:[%s2236_s4 + $0x10] sm:$0xff] }
 0x388   :  { %v786_v51 = vpop.permute.xlu1 %785  ;;  %v804_v52 = vpop.permute.xlu0 %803  ;;  %v1120_v45 = vld [vmem:[%s2241_s5 + $0x10] sm:$0xff] }
 0x389   :  { %v790_v53 = vsel %vm190_vm8, %v778_v57, %v786_v51  ;;  %v794_v48 = vsel %vm190_vm8, %v786_v51, %v778_v57  ;;  %v1004_v57 = vld [vmem:[%s2240_s7 + $0x18] sm:$0xff]  ;;  %vm1146_vm8 = vcmask 130048  }
 0x38a   :  { %v801_v35 = vmul.f32 %v1594_v36, %v794_v48  ;;  %v802_v62 = vmul.f32 %v1597_v37, %v790_v53  ;;  %v1343_v51 = vpack.c.bf16 %v1004_v57, %v1003_v49  ;;  %v1005_v53 = vld [vmem:[%s2240_s7 + $0x20] sm:$0xff]  ;;  %v1006_v48 = vld [vmem:[%s2240_s7 + $0x28] sm:$0xff] }
 0x38c   :  { %v1319_v63 = vpack.c.bf16 %v801_v35, %v799_v56  ;;  %v806_v2 = vpop.permute.xlu1 %805  ;;  %v812_v11 = vpop.permute.xlu0 %811  ;;  %v1317_v25 = vpack.c.bf16 %v802_v62, %v800_v34  ;;  %v770_v56 = vld [vmem:[%s2239_s3 + $0x18] sm:$0xff]  ;;  %v1347_v34 = vpack.c.bf16 %v1006_v48, %v1005_v53  ;;  %v1023_v35 = vld [vmem:[%s2240_s7 + $0xb0] sm:$0xff] }
 0x38d   :  { %v823_v17 = vsel %vm199_vm11, %v812_v11, %v804_v52  ;;  %v819_v40 = vsel %vm199_vm11, %v804_v52, %v812_v11  ;;  %v1345_v52 = vpack.c.bf16 %v1022_v21, %v1021_v16  ;;  %v1024_v62 = vld [vmem:[%s2240_s7 + $0xb8] sm:$0xff] }
 0x38e   :  { %1318 = vmatprep.subr.bf16.mxu0 %v1317_v25  ;;  %v828_v0 = vmul.f32 %v1617_v55, %v823_v17  ;;  %v827_v20 = vmul.f32 %v1614_v54, %v819_v40  ;;  %v1008_v11 = vld [vmem:[%s2240_s7 + $0x38] sm:$0xff]  ;;  %v1009_v17 = vld [vmem:[%s2240_s7 + $0x40] sm:$0xff]  ;;  %v1027_v40 = vld [vmem:[%s2240_s7 + $0xd0] sm:$0xff] }
 0x38f   :  { %1320 = vmatpush1.bf16.msra.mxu0 %v1319_v63  ;;  %v1432_v63 = vld [vmem:[%s2236_s4 + $0x18] sm:$0xff] }
 0x390   :  { %v814_v47 = vpop.permute.xlu1 %813  ;;  %1322 = vmatprep.subr.bf16.mxu0 %v1321_v14  ;;  %v808_v58 = vpop.permute.xlu0 %807 }
 0x391   :  { %v824_v36 = vsel %vm199_vm11, %v814_v47, %v806_v2  ;;  %v820_v37 = vsel %vm199_vm11, %v806_v2, %v814_v47  ;;  %v1349_v2 = vpack.c.bf16 %v1024_v62, %v1023_v35  ;;  %v1025_v47 = vld [vmem:[%s2240_s7 + $0xc0] sm:$0xff] }
 0x392   :  { %v830_v18 = vmul.f32 %v1617_v55, %v824_v36  ;;  %v829_v23 = vmul.f32 %v1614_v54, %v820_v37  ;;  %v1433_v36 = vld [vmem:[%s2236_s4] sm:$0xff]  ;;  %v1010_v37 = vld [vmem:[%s2240_s7 + $0x48] sm:$0xff] }
 0x393   :  { %1324 = vmatpush1.bf16.msra.mxu0 %v1323_v24 }
 0x394   :  { %v810_v14 = vpop.permute.xlu1 %809  ;;  %1326 = vmatprep.subr.bf16.mxu0 %v1325_v60  ;;  %v816_v19 = vpop.permute.xlu0 %815  ;;  %v1329_v27 = vpack.c.bf16 %v830_v18, %v828_v0  ;;  %v1331_v29 = vpack.c.bf16 %v829_v23, %v827_v20  ;;  %v1355_v18 = vpack.c.bf16 %v1010_v37, %v1009_v17  ;;  %v1028_v0 = vld [vmem:[%s2240_s7 + $0xd8] sm:$0xff] }
 0x395   :  { %v821_v38 = vsel %vm199_vm11, %v808_v58, %v816_v19  ;;  %v825_v59 = vsel %vm199_vm11, %v816_v19, %v808_v58  ;;  %v1026_v58 = vld [vmem:[%s2240_s7 + $0xc8] sm:$0xff]  ;;  %v346_v19 = vpop.f32.mrb[8].mxu0 }
 0x396   :  { %v831_v61 = vmul.f32 %v1614_v54, %v821_v38  ;;  %v832_v7 = vmul.f32 %v1617_v55, %v825_v59  ;;  %v348_v23 = vpop.f32.mrb[9].mxu0 }
 0x397   :  { %1328 = vmatpush1.bf16.msra.mxu0 %v1327_v22 }
 0x398   :  { %v818_v24 = vpop.permute.xlu1 %817  ;;  %1330 = vmatprep.subr.bf16.mxu0 %v1329_v27  ;;  %v42_v28 = vpop.permute.xlu0 %41 }
 0x399   :  { %v822_v31 = vsel %vm199_vm11, %v810_v14, %v818_v24  ;;  %v826_v60 = vsel %vm199_vm11, %v818_v24, %v810_v14  ;;  %438 = vperm.xlu1 %1413, %v42_v28   ;;  %v1357_v14 = vpack.c.bf16 %v1028_v0, %v1027_v40  ;;  %v2163_v27 = vpop.f32.mrb[10].mxu0 }
 0x39a   :  { %v833_v8 = vmul.f32 %v1614_v54, %v822_v31  ;;  %v834_v15 = vmul.f32 %v1617_v55, %v826_v60  ;;  %v1017_v54 = vld [vmem:[%s2240_s7 + $0x80] sm:$0xff]  ;;  %v1018_v55 = vld [vmem:[%s2240_s7 + $0x88] sm:$0xff]  ;;  %v2165_v20 = vpop.f32.mrb[11].mxu0 }
 0x39b   :  { %1332 = vmatpush1.bf16.msra.mxu0 %v1331_v29  ;;  %v1337_v12 = vpack.c.bf16 %v1018_v55, %v1017_v54  ;;  %v2167_v38 = vpop.f32.mrb[12].mxu0  ;;  %v1029_v29 = vld [vmem:[%s2240_s7 + $0xe0] sm:$0xff]  ;;  %v1030_v31 = vld [vmem:[%s2240_s7 + $0xe8] sm:$0xff]  ;;  %v13_v55 = vstv %s2242_s6 }
 0x39c   :  { %v1335_v30 = vpack.c.bf16 %v833_v8, %v831_v61  ;;  %v1333_v22 = vpack.c.bf16 %v834_v15, %v832_v7  ;;  %v40_v43 = vpop.permute.xlu1 %39  ;;  %v44_v44 = vpop.permute.xlu0 %43  ;;  %v1361_v60 = vpack.c.bf16 %v1030_v31, %v1029_v29  ;;  %v1013_v61 = vld [vmem:[%s2240_s7 + $0x60] sm:$0xff]  ;;  %v1014_v7 = vld [vmem:[%s2240_s7 + $0x68] sm:$0xff]  ;;  %v1031_v15 = vld [vmem:[%s2240_s7 + $0xf0] sm:$0xff]  ;;  %14 = vst [vmem:[#allocation2] sm:$0x1] %v13_v55 }
 0x39d   :  { %1415 = vset.pattern.permute.xlu1 %v1442_v3  ;;  %442 = vperm.xlu0 %1419, %v44_v44   ;;  %v2169_v59 = vpop.f32.mrb[13].mxu0  ;;  %v1363_v8 = vpack.c.bf16 %v1014_v7, %v1013_v61  ;;  %v1118_v54 = vld [vmem:[%s2241_s5] sm:$0xff] }
 0x39e   :  { %1334 = vmatprep.subr.bf16.mxu0 %v1333_v22  ;;  %386 = vperm.xlu1 %1415, %v40_v43  }
 0x39f   :  { %1336 = vmatpush1.bf16.msra.mxu0 %v1335_v30  ;;  %1369 = vmatprep.subr.bf16.mxu1 %v1337_v12  ;;  %v1032_v30 = vld [vmem:[%s2240_s7 + $0xf8] sm:$0xff] }
 0x3a0   :  { %1338 = vmatprep.subr.bf16.mxu0 %v1337_v12  ;;  %v2077_v26 = vpop.permute.xlu1 %45  ;;  %1377 = vmatpush3.bf16.msra.mxu1 %v1339_v4  ;;  %v1365_v22 = vpack.c.bf16 %v1032_v30, %v1031_v15  ;;  %v1119_v12 = vld [vmem:[%s2241_s5 + $0x8] sm:$0xff] }
 0x3a1   :  { %1420 = vset.pattern.permute.xlu0 %v1442_v3  ;;  %1370 = vmatprep.subr.bf16.mxu1 %v1341_v32 }
 0x3a2   :  { %1208 = vmatmul.mubr.msk.f32.vlgmr.msra.gmra.mrb[16].mxu0 %vm835_vm4, %v767_v10  ;;  %394 = vperm.xlu1 %1415, %v44_v44   ;;  %v1016_v44 = vld [vmem:[%s2240_s7 + $0x78] sm:$0xff] }
 0x3a3   :  { %918 = vmatprep.mubr.f32.mxu0 %v1434_v1  ;;  %390 = vperm.xlu0 %1420, %v42_v28  }
 0x3a4   :  { %1340 = vmatpush3.bf16.msra.mxu0 %v1339_v4  ;;  %1378 = vmatpush3.bf16.msra.mxu1 %v1343_v51  ;;  %v1160_v4 = vld [vmem:[#allocation2] sm:$0x1] }
 0x3a5   :  { %1342 = vmatprep.subr.bf16.mxu0 %v1341_v32  ;;  %1371 = vmatprep.subr.bf16.mxu1 %v1345_v52 }
 0x3a6   :  { %1209 = vmatmul.mubr.msk.f32.gmra.mrb[18].mxu0 %vm835_vm4, %v768_v5  ;;  %1417 = vset.pattern.permute.xlu1 %v1447_v33 }
 0x3a7   :  { %924 = vmatprep.mubr.f32.mxu0 %v1434_v1  ;;  %946 = vperm.xlu1 %1417, %v1431_v41  }
 0x3a8   :  { %398 = vperm.xlu0 %1420, %v2077_v26   ;;  %1344 = vmatpush3.bf16.msra.mxu0 %v1343_v51 }
 0x3a9   :  { %1346 = vmatprep.subr.bf16.mxu0 %v1345_v52  ;;  %1379 = vmatpush3.bf16.msra.mxu1 %v1347_v34 }
 0x3aa   :  { %1210 = vmatmul.mubr.msk.f32.gmra.mrb[20].mxu0 %vm835_vm4, %v769_v39  ;;  %1372 = vmatprep.subr.bf16.mxu1 %v1349_v2 }
 0x3ab   :  { %930 = vmatprep.mubr.f32.mxu0 %v1434_v1  ;;  %1418 = vset.pattern.permute.xlu1 %v1443_v6  ;;  %v1007_v1 = vld [vmem:[%s2240_s7 + $0x30] sm:$0xff] }
 0x3ac   :  { %434 = vperm.xlu1 %1418, %v40_v43   ;;  %1424 = vset.pattern.permute.xlu0 %v1448_v42  ;;  %v1351_v25 = vpack.c.bf16 %v1008_v11, %v1007_v1  ;;  %v1015_v43 = vld [vmem:[%s2240_s7 + $0x70] sm:$0xff] }
 0x3ad   :  { %974 = vperm.xlu0 %1424, %v1432_v63   ;;  %1348 = vmatpush3.bf16.msra.mxu0 %v1347_v34  ;;  %v1367_v10 = vpack.c.bf16 %v1016_v44, %v1015_v43  ;;  %v967_v49 = vpop.permute.xlu0 %966 }
 0x3ae   :  { %1211 = vmatmul.mubr.msk.f32.gmra.mrb[22].mxu0 %vm835_vm4, %v770_v56  ;;  %1350 = vmatprep.subr.bf16.mxu0 %v1349_v2 }
 0x3af   :  { %1380 = vmatpush3.bf16.msra.mxu1 %v1351_v25 }
 0x3b0   :  { %1421 = vset.pattern.permute.xlu1 %v1448_v42  ;;  %v1353_v42 = vpack.c.bf16 %v1026_v58, %v1025_v47 }
 0x3b1   :  { %962 = vperm.xlu1 %1421, %v1433_v36   ;;  %1426 = vset.pattern.permute.xlu0 %v1442_v3  ;;  %v943_v5 = vpop.permute.xlu1 %942 }
 0x3b2   :  { %1352 = vmatpush3.bf16.msra.mxu0 %v1351_v25  ;;  %1373 = vmatprep.subr.bf16.mxu1 %v1353_v42  ;;  %v939_v57 = vpop.permute.xlu0 %938 }
 0x3b3   :  { %1354 = vmatprep.subr.bf16.mxu0 %v1353_v42  ;;  %1381 = vmatpush3.bf16.msra.mxu1 %v1355_v18 }
 0x3b4   :  { %1374 = vmatprep.subr.bf16.mxu1 %v1357_v14  ;;  %1134 = vperm.xlu0 %1426, %v1120_v45  }
 0x3b5   :  { %970 = vperm.xlu1 %1421, %v1431_v41  }
 0x3b6   :  { %1356 = vmatpush3.bf16.msra.mxu0 %v1355_v18 }
 0x3b7   :  { %1358 = vmatprep.subr.bf16.mxu0 %v1357_v14 }
 0x3b9   :  { %1422 = vset.pattern.permute.xlu1 %v1447_v33  ;;  %v2171_v33 = vpop.f32.mrb[14].mxu0 }
 0x3ba   :  { %950 = vperm.xlu1 %1422, %v1432_v63   ;;  %v2173_v24 = vpop.f32.mrb[15].mxu0 }
 0x3be   :  { %1423 = vset.pattern.permute.xlu1 %v1443_v6  ;;  %v1011_v6 = vld [vmem:[%s2240_s7 + $0x50] sm:$0xff] }
 0x3bf   :  { %446 = vperm.xlu1 %1423, %v2077_v26  }
 0x3c3   :  { %1425 = vset.pattern.permute.xlu1 %v1442_v3  ;;  %v1012_v3 = vld [vmem:[%s2240_s7 + $0x58] sm:$0xff] }
 0x3c4   :  { %v1359_v28 = vpack.c.bf16 %v1012_v3, %v1011_v6  ;;  %1124 = vperm.xlu1 %1425, %v1118_v54  }
 0x3c6   :  { %1360 = vmatpush3.bf16.msra.mxu0 %v1359_v28  ;;  %1382 = vmatpush3.bf16.msra.mxu1 %v1359_v28 }
 0x3c7   :  { %1362 = vmatprep.subr.bf16.mxu0 %v1361_v60  ;;  %1375 = vmatprep.subr.bf16.mxu1 %v1361_v60 }
 0x3c8   :  { %1129 = vperm.xlu1 %1425, %v1119_v12  }
 0x3ca   :  { %1364 = vmatpush3.bf16.msra.mxu0 %v1363_v8  ;;  %1383 = vmatpush3.bf16.msra.mxu1 %v1363_v8 }
 0x3cb   :  { %1366 = vmatprep.subr.bf16.mxu0 %v1365_v22  ;;  %1376 = vmatprep.subr.bf16.mxu1 %v1365_v22 }
 0x3cc   :  { %1139 = vperm.xlu1 %1425, %v1121_v13  }
 0x3ce   :  { %1368 = vmatpush3.bf16.msra.mxu0 %v1367_v10  ;;  %1384 = vmatpush3.bf16.msra.mxu1 %v1367_v10 }
 0x3d0   :  { %1163 = vperm.xlu1 %1425, %v1160_v4  }
 0x418   :  { %v439_v26 = vpop.permute.xlu1 %438 }
 0x41c   :  { %v443_v21 = vpop.permute.xlu0 %442 }
 0x41d   :  { %v387_v50 = vpop.permute.xlu1 %386 }
 0x41e   :  { %v409_v41 = vmul.f32 %v387_v50, %v346_v19  ;;  %v410_v52 = vmul.f32 %v387_v50, %v348_v23 }
 0x421   :  { %v395_v46 = vpop.permute.xlu1 %394 }
 0x422   :  { %v391_v51 = vpop.permute.xlu0 %390  ;;  %v413_v0 = vmul.f32 %v395_v46, %v2167_v38 }
 0x423   :  { %v411_v62 = vmul.f32 %v391_v51, %v2163_v27  ;;  %v412_v2 = vmul.f32 %v391_v51, %v2165_v20  ;;  %v414_v27 = vmul.f32 %v395_v46, %v2169_v59 }
 0x424   :  { %v461_v8 = vadd.f32 %v443_v21, %v413_v0 }
 0x425   :  { %v459_v40 = vadd.f32 %v439_v26, %v411_v62  ;;  %v460_v23 = vadd.f32 %v439_v26, %v412_v2  ;;  %v462_v22 = vadd.f32 %v443_v21, %v414_v27 }
 0x426   :  { %v947_v32 = vpop.permute.xlu1 %946 }
 0x427   :  { %v399_v14 = vpop.permute.xlu0 %398 }
 0x428   :  { %v415_v15 = vmul.f32 %v399_v14, %v2171_v33  ;;  %v416_v43 = vmul.f32 %v399_v14, %v2173_v24 }
 0x42b   :  { %v435_v16 = vpop.permute.xlu1 %434 }
 0x42c   :  { %v457_v1 = vadd.f32 %v435_v16, %v409_v41  ;;  %v458_v11 = vadd.f32 %v435_v16, %v410_v52  ;;  %v975_v38 = vpop.permute.xlu0 %974 }
 0x430   :  { %v963_v39 = vpop.permute.xlu1 %962 }
 0x433   :  { %v1135_v2 = vpop.permute.xlu0 %1134 }
 0x434   :  { %v971_v53 = vpop.permute.xlu1 %970 }
 0x439   :  { %v951_v42 = vpop.permute.xlu1 %950 }
 0x43e   :  { %v447_v59 = vpop.permute.xlu1 %446 }
 0x43f   :  { %v463_v26 = vadd.f32 %v447_v59, %v415_v15  ;;  %v464_v33 = vadd.f32 %v447_v59, %v416_v43 }
 0x443   :  { %v1125_v51 = vpop.permute.xlu1 %1124 }
 0x475   :  { %v914_v48 = vpop.f32.mrb[16].mxu0 }
 0x476   :  { %v953_v56 = vmul.f32 %v939_v57, %v914_v48  ;;  %v916_v34 = vpop.f32.mrb[17].mxu0 }
 0x477   :  { %v954_v35 = vmul.f32 %v939_v57, %v916_v34 }
 0x478   :  { %v977_v63 = vadd.f32 %v963_v39, %v953_v56 }
 0x479   :  { %v978_v25 = vadd.f32 %v963_v39, %v954_v35  ;;  %v920_v47 = vpop.f32.mrb[18].mxu0  ;;  %v1130_v35 = vpop.permute.xlu1 %1129 }
 0x47a   :  { %v985_v58 = vadd.f32 %v977_v63, %v457_v1  ;;  %v955_v17 = vmul.f32 %v943_v5, %v920_v47  ;;  %v922_v36 = vpop.f32.mrb[19].mxu0 }
 0x47b   :  { %v956_v37 = vmul.f32 %v943_v5, %v922_v36  ;;  %v986_v18 = vadd.f32 %v978_v25, %v458_v11 }
 0x47c   :  { %v979_v19 = vadd.f32 %v967_v49, %v955_v17  ;;  %v993_v28 = vmax.f32 %v985_v58, 0.0 }
 0x47d   :  { %v980_v6 = vadd.f32 %v967_v49, %v956_v37  ;;  %v926_v3 = vpop.f32.mrb[20].mxu0  ;;  %v994_v20 = vmax.f32 %v986_v18, 0.0 }
 0x47e   :  { %v987_v29 = vadd.f32 %v979_v19, %v459_v40  ;;  %v957_v31 = vmul.f32 %v947_v32, %v926_v3  ;;  %v928_v60 = vpop.f32.mrb[21].mxu0  ;;  %v1140_v40 = vpop.permute.xlu1 %1139  ;;  %v1167_v3 = vshrl.u32 %v47_v9, 7 }
 0x47f   :  { %v958_v61 = vmul.f32 %v947_v32, %v928_v60  ;;  %1097 = vmatprep.mubr.f32.mxu0 %v994_v20  ;;  %v988_v7 = vadd.f32 %v980_v6, %v460_v23 }
 0x480   :  { %v981_v30 = vadd.f32 %v971_v53, %v957_v31  ;;  %1098 = vmatmul.mubr.f32.vlgmr.msra.gmra.mrb[24].mxu0 %v993_v28  ;;  %v995_v55 = vmax.f32 %v987_v29, 0.0  ;;  %v1168_v28 = vsub.s32 0, %v1167_v3 }
 0x481   :  { %v982_v44 = vadd.f32 %v971_v53, %v958_v61  ;;  %v932_v10 = vpop.f32.mrb[22].mxu0  ;;  %v996_v54 = vmax.f32 %v988_v7, 0.0 }
 0x482   :  { %v959_v45 = vmul.f32 %v951_v42, %v932_v10  ;;  %v934_v12 = vpop.f32.mrb[23].mxu0  ;;  %v989_v13 = vadd.f32 %v981_v30, %v461_v8  ;;  %v1164_v31 = vpop.permute.xlu1 %1163 }
 0x483   :  { %v960_v4 = vmul.f32 %v951_v42, %v934_v12  ;;  %1102 = vmatprep.mubr.f32.mxu1 %v996_v54  ;;  %v990_v5 = vadd.f32 %v982_v44, %v462_v22  ;;  %v1169_v7 = vrot.slane %v1164_v31, %v1168_v28 }
 0x484   :  { %v983_v50 = vadd.f32 %v975_v38, %v959_v45  ;;  %1103 = vmatmul.mubr.f32.vlgmr.msra.gmra.mrb[8].mxu1 %v995_v55  ;;  %v997_v57 = vmax.f32 %v989_v13, 0.0 }
 0x485   :  { %v984_v46 = vadd.f32 %v975_v38, %v960_v4  ;;  %v998_v49 = vmax.f32 %v990_v5, 0.0 }
 0x486   :  { %v991_v32 = vadd.f32 %v983_v50, %v463_v26 }
 0x487   :  { %v992_v24 = vadd.f32 %v984_v46, %v464_v33  ;;  %1107 = vmatprep.mubr.f32.mxu1 %v998_v49 }
 0x488   :  { %1108 = vmatmul.mubr.f32.gmra.mrb[10].mxu1 %v997_v57  ;;  %v999_v21 = vmax.f32 %v991_v32, 0.0 }
 0x489   :  { %v1000_v16 = vmax.f32 %v992_v24, 0.0 }
 0x48b   :  { %1112 = vmatprep.mubr.f32.mxu1 %v1000_v16 }
 0x48c   :  { %1113 = vmatmul.mubr.f32.gmra.mrb[12].mxu1 %v999_v21 }
 0x553   :  { %v1245_v39 = vpop.f32.mrb[24].mxu0 }
 0x554   :  { %v1246_v41 = vpop.f32.mrb[25].mxu0 }
 0x555   :  { %v1247_v52 = vadd.f32 %v1246_v41, %v1245_v39 }
 0x557   :  { %v1248_v53 = vpop.f32.mrb[8].mxu1  ;;  %v1142_v56 = vmul.f32 %v1247_v52, %v1125_v51 }
 0x558   :  { %v1249_v48 = vpop.f32.mrb[9].mxu1 }
 0x559   :  { %v1250_v34 = vadd.f32 %v1249_v48, %v1248_v53  ;;  %v1147_v11 = vsel %vm1146_vm8, %v1142_v56, 0.0 }
 0x55b   :  { %v1143_v62 = vmul.f32 %v1250_v34, %v1130_v35  ;;  %v1251_v1 = vpop.f32.mrb[10].mxu1 }
 0x55c   :  { %v1252_v63 = vpop.f32.mrb[11].mxu1 }
 0x55d   :  { %v1148_v25 = vsel %vm1146_vm8, %v1143_v62, 0.0  ;;  %v1253_v47 = vadd.f32 %v1252_v63, %v1251_v1 }
 0x55e   :  { %v1149_v58 = vadd.f32 %v1148_v25, %v1147_v11 }
 0x55f   :  { %v1144_v17 = vmul.f32 %v1253_v47, %v1135_v2  ;;  %v1254_v36 = vpop.f32.mrb[12].mxu1 }
 0x560   :  { %v1255_v42 = vpop.f32.mrb[13].mxu1 }
 0x561   :  { %v1150_v37 = vsel %vm1146_vm8, %v1144_v17, 0.0  ;;  %v1256_v18 = vadd.f32 %v1255_v42, %v1254_v36 }
 0x562   :  { %v1151_v0 = vadd.f32 %v1150_v37, %v1149_v58 }
 0x563   :  { %v1145_v14 = vmul.f32 %v1256_v18, %v1140_v40 }
 0x565   :  { %v1152_v19 = vsel %vm1146_vm8, %v1145_v14, 0.0 }
 0x566   :  { %v1153_v23 = vadd.f32 %v1152_v19, %v1151_v0 }
 0x568   :  { %v1154_v27 = vrot.slane %v1153_v23, 4 }
 0x56a   :  { %v1155_v6 = vadd.f32 %v1154_v27, %v1153_v23 }
 0x56c   :  { %v1156_v20 = vrot.slane %v1155_v6, 2 }
 0x56e   :  { %v1157_v29 = vadd.f32 %v1156_v20, %v1155_v6 }
 0x570   :  { %v1158_v60 = vrot.slane %v1157_v29, 1 }
 0x572   :  { %v1159_v61 = vadd.f32 %v1158_v60, %v1157_v29 }
 0x574   :  { %v1170_v8 = vadd.f32 %v1169_v7, %v1159_v61 }
 0x576   :  { %v1212_v15 = vmul.f32 -1.442695, %v1170_v8 }
 0x578   :  { %1427 = vpow2.f32 %v1212_v15 }
 0x582   :  { %v1428_v30 = vpop.eup %1427 }
 0x583   :  { %v1174_v38 = vadd.f32 1.0, %v1428_v30 }
 0x585   :  { %1429 = vrcp.f32 %v1174_v38 }
 0x58f   :  { %v1430_v22 = vpop.eup %1429 }
 0x590   :  { %1177 = vst.msk [vmem:[%s2243_s8] sm:$0xff] %vm1146_vm8, %v1430_v22 }

</bundles_post_ra>
